<compile_context>
chip_gen: v7x
topology: tpu7x:2x2x1
jax: 0.10.0
libtpu: 0.0.40
codegen_flags: <defaults>
</compile_context>

<pallas_src>
import functools

import jax
import jax.numpy as jnp
from jax.experimental import pallas as pl
from jax.experimental.pallas import tpu as pltpu

NEG_SLOPE = 0.01      # nn.LeakyReLU() default negative_slope
LANE = 128
TILE_CAP = 512        # max batch-tile rows (>=85% of HBM roofline per tiling data)
TILE_FLOOR = 256      # smallest tile considered when minimizing padding


def _leaky_relu(x):
    return jnp.where(x >= 0, x, NEG_SLOPE * x)


def _round_up(x, m):
    return (x + m - 1) // m * m


def _default_bf16_epilogue():
    """bf16 bias-add/leaky_relu only where the VPU has native bf16 (v6e/v7x)."""
    try:
        kind = jax.devices()[0].device_kind.lower()
    except Exception:
        return True
    return not any(v in kind for v in ("v2", "v3", "v4", "v5"))


def _pick_batch_tile(batch):
    """Sublane-aligned batch tile with minimal padded rows.

    B <= TILE_CAP: one tile of round_up(B, 8) rows (no tile-induced padding).
    B  > TILE_CAP: largest tile in [TILE_FLOOR, TILE_CAP] (multiple of 8)
                   whose round-up padding is minimal (avoids e.g. B=260 ->
                   Bp=512 nearly doubling the work).
    """
    br = _round_up(batch, 8)
    if br <= TILE_CAP:
        return br
    min_pad = br - batch
    best_tb = TILE_CAP
    best_pad = _round_up(batch, TILE_CAP) - batch
    for tb in range(TILE_CAP, TILE_FLOOR - 1, -8):
        pad = _round_up(batch, tb) - batch
        if pad < best_pad:
            best_tb, best_pad = tb, pad
            if pad == min_pad:
                break
    return best_tb


def mlp_head_kernel(z_ref, w0_ref, b0_ref, w1_ref, b1_ref, w2_ref, b2_ref,
                    o_ref, *, bf16_epilogue):
    """Fused head: lrelu -> fc0 -> lrelu -> fc1 -> lrelu -> out (lane-padded).

    z and weights arrive as bf16; matmuls are bf16 x bf16 with f32 MXU
    accumulation.  Epilogues (bias add + leaky_relu) run in bf16 on chips with
    a native bf16 VPU, otherwise in f32.
    """
    z = _leaky_relu(z_ref[...])                                  # bf16 in/out

    h0 = jnp.dot(z, w0_ref[...], preferred_element_type=jnp.float32)
    if bf16_epilogue:
        h0 = _leaky_relu(h0.astype(jnp.bfloat16) + b0_ref[...])
    else:
        h0 = _leaky_relu(h0 + b0_ref[...].astype(jnp.float32))
        h0 = h0.astype(jnp.bfloat16)

    h1 = jnp.dot(h0, w1_ref[...], preferred_element_type=jnp.float32)
    if bf16_epilogue:
        h1 = _leaky_relu(h1.astype(jnp.bfloat16) + b1_ref[...])
    else:
        h1 = _leaky_relu(h1 + b1_ref[...].astype(jnp.float32))
        h1 = h1.astype(jnp.bfloat16)

    o = jnp.dot(h1, w2_ref[...], preferred_element_type=jnp.float32)
    # Final output stays f32 (module returns f32 Q-values / actions).
    o_ref[...] = (o + b2_ref[...].astype(jnp.float32)).astype(o_ref.dtype)


@functools.partial(jax.jit, static_argnames=("num_axns", "bf16_epilogue"))
def net_head_forward(z, params, *, num_axns, bf16_epilogue=None):
    """z: [B, flatten_nodes] backbone features. Returns [B, num_axns] f32."""
    if bf16_epilogue is None:
        bf16_epilogue = _default_bf16_epilogue()

    B, in_features = z.shape
    w0, b0, w1, b1, w2p, b2p = params      # w2/b2 already lane-padded on host
    h0_n = w0.shape[1]
    h1_n = w1.shape[1]
    out_pad = w2p.shape[1]

    # bf16 z halves the only per-tile HBM read.
    # TODO(synk): have the CustomResNet backbone emit bf16 features directly
    #             so this cast never materializes an extra HBM copy.
    zb = z.astype(jnp.bfloat16)

    tb = _pick_batch_tile(B)
    Bp = _round_up(B, tb)
    zp = jnp.pad(zb, ((0, Bp - B), (0, 0))) if Bp != B else zb
    num_tiles = Bp // tb

    # Megacore sharding only once the (per-core duplicated on v7x) weight DMA
    # amortizes over >= 4 batch tiles.
    semantics = ("parallel",) if num_tiles >= 4 else ("arbitrary",)

    def weight_spec(shape):
        # Constant index_map -> fetched once, VMEM-resident; single-buffered
        # so the never-changing blocks don't reserve 2x VMEM.
        return pl.BlockSpec(shape, lambda i: (0, 0),
                            pipeline_mode=pl.Buffered(1))

    flops = 2 * Bp * (in_features * h0_n + h0_n * h1_n + h1_n * out_pad)
    bytes_accessed = (
        zp.size * zp.dtype.itemsize
        + sum(int(p.size) * p.dtype.itemsize for p in params)
        + Bp * out_pad * 4)

    kernel = functools.partial(mlp_head_kernel, bf16_epilogue=bf16_epilogue)

    out = pl.pallas_call(
        kernel,
        out_shape=jax.ShapeDtypeStruct((Bp, out_pad), jnp.float32),
        grid=(num_tiles,),
        in_specs=[
            pl.BlockSpec((tb, in_features), lambda i: (i, 0)),   # z tile
            weight_spec(w0.shape),
            weight_spec(b0.shape),
            weight_spec(w1.shape),
            weight_spec(b1.shape),
            weight_spec(w2p.shape),
            weight_spec(b2p.shape),
        ],
        out_specs=pl.BlockSpec((tb, out_pad), lambda i: (i, 0)),
        compiler_params=pltpu.CompilerParams(
            dimension_semantics=semantics,
            vmem_limit_bytes=16 << 20),
        cost_estimate=pl.CostEstimate(flops=flops,
                                      transcendentals=0,
                                      bytes_accessed=bytes_accessed),
    )(zp, w0, b0, w1, b1, w2p, b2p)

    return out[:B, :num_axns]


def init_params(key, in_features, num_axns):
    """Deterministic init mimicking torch.nn.Linear defaults.

    Weight/bias ~ U(-1/sqrt(fan_in), 1/sqrt(fan_in)); out-layer bias is
    explicitly zeroed (nn.init.zeros_ in the reference __init__).  Weights are
    stored transposed [in_features, out_features], cast to bf16 (halves weight
    DMA; MXU accumulates f32), and the tiny out layer is lane-padded to 128
    columns ONCE here (host-side) so no pad/copy runs per forward call.
    """
    dims = [(in_features, 1024), (1024, 512), (512, num_axns)]
    params = []
    for i, (fan_in, fan_out) in enumerate(dims):
        key, kw, kb = jax.random.split(key, 3)
        bound = 1.0 / jnp.sqrt(float(fan_in))
        w = jax.random.uniform(kw, (fan_in, fan_out), jnp.float32,
                               minval=-bound, maxval=bound)
        if i == len(dims) - 1:
            b = jnp.zeros((1, fan_out), jnp.float32)      # nn.init.zeros_
            out_pad = max(LANE, _round_up(fan_out, LANE))
            w = jnp.pad(w, ((0, 0), (0, out_pad - fan_out)))
            b = jnp.pad(b, ((0, 0), (0, out_pad - fan_out)))
        else:
            b = jax.random.uniform(kb, (1, fan_out), jnp.float32,
                                   minval=-bound, maxval=bound)
        params += [w.astype(jnp.bfloat16), b.astype(jnp.bfloat16)]
    return tuple(params)


def reference_forward(z, params):
    """Pure-JAX f32 reference using the same (bf16-stored) parameter values."""
    w0, b0, w1, b1, w2, b2 = [p.astype(jnp.float32) for p in params]
    z = _leaky_relu(z)
    z = _leaky_relu(z @ w0 + b0)
    z = _leaky_relu(z @ w1 + b1)
    return z @ w2 + b2


if __name__ == "__main__":
    # Configuration implied by the module: version=18 -> flatten_nodes=512,
    # multi_res=False, num_im_per_state=1 -> fc_hidden0 in_features = 512.
    FLATTEN_NODES = 512
    NUM_AXNS = 4
    BATCH = 8

    key = jax.random.PRNGKey(0)
    key, kz = jax.random.split(key)
    # Backbone (CustomResNet) features feeding the head.
    z = jax.random.normal(kz, (BATCH, FLATTEN_NODES), jnp.float32)

    params = init_params(key, FLATTEN_NODES, NUM_AXNS)

    out = net_head_forward(z, params, num_axns=NUM_AXNS)
    out = jax.block_until_ready(out)

    ref = reference_forward(z, params)[:, :NUM_AXNS]
    assert out.shape == (BATCH, NUM_AXNS)
    # Looser tolerance: kernel runs activations through bf16 for the MXU.
    assert jnp.allclose(out, ref, atol=5e-2, rtol=5e-2), "mismatch vs JAX ref"

    print("KERNEL_OK")
</pallas_src>

<mosaic_0001>
module attributes {stable_mosaic.version = 11 : i64} {
  func.func @mlp_head_kernel(%arg0: i32, %arg1: memref<8x512xbf16, #tpu.memory_space<vmem>>, %arg2: memref<512x1024xbf16, #tpu.memory_space<vmem>>, %arg3: memref<1x1024xbf16, #tpu.memory_space<vmem>>, %arg4: memref<1024x512xbf16, #tpu.memory_space<vmem>>, %arg5: memref<1x512xbf16, #tpu.memory_space<vmem>>, %arg6: memref<512x128xbf16, #tpu.memory_space<vmem>>, %arg7: memref<1x128xbf16, #tpu.memory_space<vmem>>, %arg8: memref<8x128xf32, #tpu.memory_space<vmem>>) attributes {dimension_semantics = [#tpu.dimension_semantics<arbitrary>], iteration_bounds = array<i64: 1>, scalar_prefetch = 0 : i64, scratch_operands = 0 : i64, tpu.core_type = #tpu.core_type<tc>, window_params = [{transform_indices = @transform_0, window_bounds = array<i64: 8, 512>}, {pipeline_mode = #tpu.pipeline_mode<synchronous>, transform_indices = @transform_1, window_bounds = array<i64: 512, 1024>}, {pipeline_mode = #tpu.pipeline_mode<synchronous>, transform_indices = @transform_2, window_bounds = array<i64: 1, 1024>}, {pipeline_mode = #tpu.pipeline_mode<synchronous>, transform_indices = @transform_3, window_bounds = array<i64: 1024, 512>}, {pipeline_mode = #tpu.pipeline_mode<synchronous>, transform_indices = @transform_4, window_bounds = array<i64: 1, 512>}, {pipeline_mode = #tpu.pipeline_mode<synchronous>, transform_indices = @transform_5, window_bounds = array<i64: 512, 128>}, {pipeline_mode = #tpu.pipeline_mode<synchronous>, transform_indices = @transform_6, window_bounds = array<i64: 1, 128>}, {transform_indices = @transform_7, window_bounds = array<i64: 8, 128>}]} {
    %c0 = arith.constant 0 : index
    %c0_0 = arith.constant 0 : index
    %0 = vector.load %arg1[%c0, %c0_0] : memref<8x512xbf16, #tpu.memory_space<vmem>>, vector<8x512xbf16>
    %cst = arith.constant 0.000000e+00 : bf16
    %1 = vector.broadcast %cst : bf16 to vector<8x512xbf16>
    %2 = arith.cmpf oge, %0, %1 : vector<8x512xbf16>
    %cst_1 = arith.constant 1.000980e-02 : bf16
    %3 = vector.broadcast %cst_1 : bf16 to vector<8x512xbf16>
    %4 = arith.mulf %3, %0 : vector<8x512xbf16>
    %5 = arith.select %2, %0, %4 : vector<8x512xi1>, vector<8x512xbf16>
    %c0_2 = arith.constant 0 : index
    %c0_3 = arith.constant 0 : index
    %6 = vector.load %arg2[%c0_2, %c0_3] : memref<512x1024xbf16, #tpu.memory_space<vmem>>, vector<512x1024xbf16>
    %cst_4 = arith.constant dense<0.000000e+00> : vector<8x1024xf32>
    %7 = tpu.matmul %5, %6, %cst_4 {dimension_numbers = #tpu.dot_dimension_numbers<[1], [0], [0], [1], [0, 0, 1, 1], [], []>} : vector<8x512xbf16>, vector<512x1024xbf16>, vector<8x1024xf32> -> vector<8x1024xf32>
    %8 = arith.truncf %7 : vector<8x1024xf32> to vector<8x1024xbf16>
    %c0_5 = arith.constant 0 : index
    %c0_6 = arith.constant 0 : index
    %9 = vector.load %arg3[%c0_5, %c0_6] : memref<1x1024xbf16, #tpu.memory_space<vmem>>, vector<1x1024xbf16>
    %10 = vector.broadcast %9 : vector<1x1024xbf16> to vector<8x1024xbf16>
    %11 = arith.addf %8, %10 : vector<8x1024xbf16>
    %cst_7 = arith.constant 0.000000e+00 : bf16
    %12 = vector.broadcast %cst_7 : bf16 to vector<8x1024xbf16>
    %13 = arith.cmpf oge, %11, %12 : vector<8x1024xbf16>
    %cst_8 = arith.constant 1.000980e-02 : bf16
    %14 = vector.broadcast %cst_8 : bf16 to vector<8x1024xbf16>
    %15 = arith.mulf %14, %11 : vector<8x1024xbf16>
    %16 = arith.select %13, %11, %15 : vector<8x1024xi1>, vector<8x1024xbf16>
    %c0_9 = arith.constant 0 : index
    %c0_10 = arith.constant 0 : index
    %17 = vector.load %arg4[%c0_9, %c0_10] : memref<1024x512xbf16, #tpu.memory_space<vmem>>, vector<1024x512xbf16>
    %cst_11 = arith.constant dense<0.000000e+00> : vector<8x512xf32>
    %18 = tpu.matmul %16, %17, %cst_11 {dimension_numbers = #tpu.dot_dimension_numbers<[1], [0], [0], [1], [0, 0, 1, 1], [], []>} : vector<8x1024xbf16>, vector<1024x512xbf16>, vector<8x512xf32> -> vector<8x512xf32>
    %19 = arith.truncf %18 : vector<8x512xf32> to vector<8x512xbf16>
    %c0_12 = arith.constant 0 : index
    %c0_13 = arith.constant 0 : index
    %20 = vector.load %arg5[%c0_12, %c0_13] : memref<1x512xbf16, #tpu.memory_space<vmem>>, vector<1x512xbf16>
    %21 = vector.broadcast %20 : vector<1x512xbf16> to vector<8x512xbf16>
    %22 = arith.addf %19, %21 : vector<8x512xbf16>
    %cst_14 = arith.constant 0.000000e+00 : bf16
    %23 = vector.broadcast %cst_14 : bf16 to vector<8x512xbf16>
    %24 = arith.cmpf oge, %22, %23 : vector<8x512xbf16>
    %cst_15 = arith.constant 1.000980e-02 : bf16
    %25 = vector.broadcast %cst_15 : bf16 to vector<8x512xbf16>
    %26 = arith.mulf %25, %22 : vector<8x512xbf16>
    %27 = arith.select %24, %22, %26 : vector<8x512xi1>, vector<8x512xbf16>
    %c0_16 = arith.constant 0 : index
    %c0_17 = arith.constant 0 : index
    %28 = vector.load %arg6[%c0_16, %c0_17] : memref<512x128xbf16, #tpu.memory_space<vmem>>, vector<512x128xbf16>
    %cst_18 = arith.constant dense<0.000000e+00> : vector<8x128xf32>
    %29 = tpu.matmul %27, %28, %cst_18 {dimension_numbers = #tpu.dot_dimension_numbers<[1], [0], [0], [1], [0, 0, 1, 1], [], []>} : vector<8x512xbf16>, vector<512x128xbf16>, vector<8x128xf32> -> vector<8x128xf32>
    %c0_19 = arith.constant 0 : index
    %c0_20 = arith.constant 0 : index
    %30 = vector.load %arg7[%c0_19, %c0_20] : memref<1x128xbf16, #tpu.memory_space<vmem>>, vector<1x128xbf16>
    %31 = arith.extf %30 : vector<1x128xbf16> to vector<1x128xf32>
    %32 = vector.broadcast %31 : vector<1x128xf32> to vector<8x128xf32>
    %33 = arith.addf %29, %32 : vector<8x128xf32>
    %c0_21 = arith.constant 0 : index
    %c0_22 = arith.constant 0 : index
    %34 = vector.load %arg8[%c0_21, %c0_22] : memref<8x128xf32, #tpu.memory_space<vmem>>, vector<8x128xf32>
    tpu.vector_store %arg8[%c0_21, %c0_22], %33 {strides = array<i32>} : memref<8x128xf32, #tpu.memory_space<vmem>>, vector<8x128xf32>,
    return
  }
  func.func @transform_0(%arg0: i32) -> (i32, i32) {
    %c0_i32 = arith.constant 0 : i32
    %c0_i32_0 = arith.constant 0 : i32
    return %arg0, %c0_i32 : i32, i32
  }
  func.func @transform_1(%arg0: i32) -> (i32, i32) {
    %c0_i32 = arith.constant 0 : i32
    %c0_i32_0 = arith.constant 0 : i32
    %c0_i32_1 = arith.constant 0 : i32
    return %c0_i32, %c0_i32_0 : i32, i32
  }
  func.func @transform_2(%arg0: i32) -> (i32, i32) {
    %c0_i32 = arith.constant 0 : i32
    %c0_i32_0 = arith.constant 0 : i32
    %c0_i32_1 = arith.constant 0 : i32
    return %c0_i32, %c0_i32_0 : i32, i32
  }
  func.func @transform_3(%arg0: i32) -> (i32, i32) {
    %c0_i32 = arith.constant 0 : i32
    %c0_i32_0 = arith.constant 0 : i32
    %c0_i32_1 = arith.constant 0 : i32
    return %c0_i32, %c0_i32_0 : i32, i32
  }
  func.func @transform_4(%arg0: i32) -> (i32, i32) {
    %c0_i32 = arith.constant 0 : i32
    %c0_i32_0 = arith.constant 0 : i32
    %c0_i32_1 = arith.constant 0 : i32
    return %c0_i32, %c0_i32_0 : i32, i32
  }
  func.func @transform_5(%arg0: i32) -> (i32, i32) {
    %c0_i32 = arith.constant 0 : i32
    %c0_i32_0 = arith.constant 0 : i32
    %c0_i32_1 = arith.constant 0 : i32
    return %c0_i32, %c0_i32_0 : i32, i32
  }
  func.func @transform_6(%arg0: i32) -> (i32, i32) {
    %c0_i32 = arith.constant 0 : i32
    %c0_i32_0 = arith.constant 0 : i32
    %c0_i32_1 = arith.constant 0 : i32
    return %c0_i32, %c0_i32_0 : i32, i32
  }
  func.func @transform_7(%arg0: i32) -> (i32, i32) {
    %c0_i32 = arith.constant 0 : i32
    %c0_i32_0 = arith.constant 0 : i32
    return %arg0, %c0_i32 : i32, i32
  }
}

</mosaic_0001>

<bundles_post_ra>
// kernel: net_head_forward.1
= control target key start
LH: loop header
LB: loop body
LE: loop exit
PB: predicated region body
PF: predicated region fallthrough
CT: control target
= control target key end

     0   :  { %12 = vsyncpa [#allocation3], 0  ;;  %s5709_s0 = inlined_call_operand.vmem [shape: bf16[8,512], index: 0, kind: input, shape index: {}]   ;;  %s5710_s1 = inlined_call_operand.hbm [shape: bf16[512,1024], index: 1, kind: input, shape index: {}]   ;;  %s5711_s2 = inlined_call_operand.vmem [shape: bf16[1,1024], index: 2, kind: input, shape index: {}]   ;;  %s5712_s3 = inlined_call_operand.hbm [shape: bf16[1024,512], index: 3, kind: input, shape index: {}]   ;;  %s5713_s4 = inlined_call_operand.vmem [shape: bf16[1,512], index: 4, kind: input, shape index: {}]   ;;  %s5714_s5 = inlined_call_operand.hbm [shape: bf16[512,128], index: 5, kind: input, shape index: {}]   ;;  %s5715_s6 = inlined_call_operand.vmem [shape: bf16[1,128], index: 6, kind: input, shape index: {}]   ;;  %s5716_s7 = inlined_call_operand.vmem [shape: f32[8,128], index: 7, kind: output, shape index: {}]  }
   0x1   :  { %13 = vsyncpa [#allocation5], 0  ;;  %s5519_s24 = smov [#allocation4]   ;;  %s5449_s28 = scalar_lea.hbm %s5712_s3, 32768 }
   0x2   :  { %s35_s25 = sshll.u32 %s5519_s24, 4  ;;  %p5450_p0 = scmp.ne.s32.totalorder %s5712_s3, %s5449_s28  ;;  %s36_s25 = int_to_ptr.vmem [resolvable:$true] %s35_s25 }
   0x3   :  { %p5453_p1 = scmp.lt.u32.totalorder %s5449_s28, %s5712_s3 }
   0x5   :  { %p5455_p2 = pnand %p5453_p1, %p5450_p0 }
   0x7   :  { %5458 = shalt.err (!%p5455_p2)
}
   0x8   :  { %s5459_s10 = scalar_lea.vmem %s36_s25, 32768  ;;  %p5464_p4 = scmp.lt.s32.totalorder %s36_s25, %s36_s25 }
   0x9   :  { %p5460_p3 = scmp.ne.s32.totalorder %s36_s25, %s5459_s10  ;;  %p5465_p5 = scmp.lt.s32.totalorder %s5459_s10, %s5459_s10 }
   0xb   :  { %p5466_p6 = por %p5465_p5, %p5464_p4 }
   0xd   :  { %p5467_p7 = pnand %p5466_p6, %p5460_p3 }
   0xf   :  { %5470 = shalt.err (!%p5467_p7)
}
  0x10   :  { %s5520_s11 = smov 256   ;;  %s5521_s12 = smov 16  }
  0x11   :  { %41 = dma.hbm_to_vmem [thread:$0]  %s5712_s3, 32768, %s36_s25, [#allocation5], %s5520_s11, %s5520_s11, %s5521_s12  }
  0x12   :  { %s5522_s15 = smov [#allocation2]   ;;  %s5471_s19 = scalar_lea.hbm %s5710_s1, 32768 }
  0x13   :  { %s21_s16 = sshll.u32 %s5522_s15, 4  ;;  %p5472_p8 = scmp.ne.s32.totalorder %s5710_s1, %s5471_s19  ;;  %s22_s16 = int_to_ptr.vmem [resolvable:$true] %s21_s16 }
  0x14   :  { %p5475_p9 = scmp.lt.u32.totalorder %s5471_s19, %s5710_s1 }
  0x16   :  { %p5477_p10 = pnand %p5475_p9, %p5472_p8 }
  0x18   :  { %5480 = shalt.err (!%p5477_p10)
}
  0x19   :  { %s5481_s24 = scalar_lea.vmem %s22_s16, 32768  ;;  %p5486_p12 = scmp.lt.s32.totalorder %s22_s16, %s22_s16 }
  0x1a   :  { %p5482_p11 = scmp.ne.s32.totalorder %s22_s16, %s5481_s24  ;;  %p5487_p13 = scmp.lt.s32.totalorder %s5481_s24, %s5481_s24 }
  0x1c   :  { %p5488_p0 = por %p5487_p13, %p5486_p12 }
  0x1e   :  { %p5489_p1 = pnand %p5488_p0, %p5482_p11 }
  0x20   :  { %5492 = shalt.err (!%p5489_p1)
}
  0x21   :  { %s5523_s3 = smov 512   ;;  %s5524_s25 = smov 32  }
  0x22   :  { %27 = dma.hbm_to_vmem [thread:$0]  %s5710_s1, 32768, %s22_s16, [#allocation3], %s5523_s3, %s5523_s3, %s5524_s25  }
  0x23   :  { %s5525_s28 = smov [#allocation6]   ;;  %s5493_s9 = scalar_lea.hbm %s5714_s5, 4096 }
  0x24   :  { %s49_s29 = sshll.u32 %s5525_s28, 4  ;;  %p5494_p2 = scmp.ne.s32.totalorder %s5714_s5, %s5493_s9  ;;  %s50_s29 = int_to_ptr.vmem [resolvable:$true] %s49_s29 }
  0x25   :  { %p5497_p3 = scmp.lt.u32.totalorder %s5493_s9, %s5714_s5 }
  0x27   :  { %p5499_p4 = pnand %p5497_p3, %p5494_p2 }
  0x29   :  { %5502 = shalt.err (!%p5499_p4)
}
  0x2a   :  { %s5503_s14 = scalar_lea.vmem %s50_s29, 4096  ;;  %p5508_p6 = scmp.lt.s32.totalorder %s50_s29, %s50_s29 }
  0x2b   :  { %p5504_p5 = scmp.ne.s32.totalorder %s50_s29, %s5503_s14  ;;  %p5509_p7 = scmp.lt.s32.totalorder %s5503_s14, %s5503_s14 }
  0x2d   :  { %p5510_p8 = por %p5509_p7, %p5508_p6 }
  0x2f   :  { %p5511_p9 = pnand %p5510_p8, %p5504_p5 }
  0x31   :  { %5514 = shalt.err (!%p5511_p9)
}
  0x32   :  { %s5526_s1 = smov 64   ;;  %s5527_s15 = smov 4  }
  0x33   :  { %55 = dma.hbm_to_vmem [thread:$0]  %s5714_s5, 4096, %s50_s29, [#allocation5], %s5526_s1, %s5526_s1, %s5527_s15  }
  0x34   :  { %5515 = dma.done.wait [#allocation3], 32768  }
  0x35   :  { %5516 = vsyncadd [#allocation3], 4294934528 }
  0x36   :  { %5517 = dma.done.wait [#allocation5], 36864  }
  0x37   :  { %5518 = vsyncadd [#allocation5], 4294930432  ;;  %v77_v0 = vld [vmem:[#allocation2] sm:$0xff]  ;;  %v78_v2 = vld [vmem:[#allocation2 + $0x8] sm:$0xff] }
  0x38   :  { %v81_v1 = vld [vmem:[#allocation2 + $0x20] sm:$0xff]  ;;  %v82_v4 = vld [vmem:[#allocation2 + $0x28] sm:$0xff] }
  0x39   :  { %v4394_v3 = vcombine.high %v77_v0, %v81_v1  ;;  %v4393_v5 = vcombine.low %v77_v0, %v81_v1  ;;  %v85_v6 = vld [vmem:[#allocation2 + $0x40] sm:$0xff]  ;;  %v4396_v8 = vcombine.high %v78_v2, %v82_v4  ;;  %v4395_v9 = vcombine.low %v78_v2, %v82_v4  ;;  %v86_v11 = vld [vmem:[#allocation2 + $0x48] sm:$0xff] }
  0x3a   :  { %v89_v7 = vld [vmem:[#allocation2 + $0x60] sm:$0xff]  ;;  %v90_v12 = vld [vmem:[#allocation2 + $0x68] sm:$0xff] }
  0x3b   :  { %v4402_v10 = vcombine.high %v85_v6, %v89_v7  ;;  %v93_v13 = vld [vmem:[#allocation2 + $0x80] sm:$0xff]  ;;  %1627 = vmatprep.subr.bf16.mxu0 %v4394_v3  ;;  %v4404_v14 = vcombine.high %v86_v11, %v90_v12  ;;  %v94_v16 = vld [vmem:[#allocation2 + $0x88] sm:$0xff]  ;;  %1709 = vmatprep.subr.bf16.mxu1 %v4396_v8  ;;  %v4401_v18 = vcombine.low %v85_v6, %v89_v7 }
  0x3c   :  { %v97_v15 = vld [vmem:[#allocation2 + $0xa0] sm:$0xff]  ;;  %v98_v17 = vld [vmem:[#allocation2 + $0xa8] sm:$0xff]  ;;  %1628 = vmatpush1.bf16.msra.mxu0 %v4393_v5  ;;  %1710 = vmatpush1.bf16.msra.mxu1 %v4395_v9  ;;  %v4403_v19 = vcombine.low %v86_v11, %v90_v12 }
  0x3d   :  { %1629 = vmatprep.subr.bf16.mxu0 %v4402_v10  ;;  %v4410_v20 = vcombine.high %v93_v13, %v97_v15  ;;  %1711 = vmatprep.subr.bf16.mxu1 %v4404_v14  ;;  %v4412_v21 = vcombine.high %v94_v16, %v98_v17  ;;  %v101_v22 = vld [vmem:[#allocation2 + $0xc0] sm:$0xff]  ;;  %v102_v24 = vld [vmem:[#allocation2 + $0xc8] sm:$0xff]  ;;  %v4409_v26 = vcombine.low %v93_v13, %v97_v15 }
  0x3e   :  { %v105_v23 = vld [vmem:[#allocation2 + $0xe0] sm:$0xff]  ;;  %v106_v25 = vld [vmem:[#allocation2 + $0xe8] sm:$0xff]  ;;  %v4411_v27 = vcombine.low %v94_v16, %v98_v17 }
  0x3f   :  { %v4418_v28 = vcombine.high %v101_v22, %v105_v23  ;;  %v4420_v29 = vcombine.high %v102_v24, %v106_v25  ;;  %v109_v30 = vld [vmem:[#allocation2 + $0x100] sm:$0xff]  ;;  %v110_v32 = vld [vmem:[#allocation2 + $0x108] sm:$0xff]  ;;  %v4417_v34 = vcombine.low %v101_v22, %v105_v23  ;;  %v4419_v35 = vcombine.low %v102_v24, %v106_v25 }
  0x40   :  { %1630 = vmatpush1.bf16.msra.mxu0 %v4401_v18  ;;  %1712 = vmatpush1.bf16.msra.mxu1 %v4403_v19  ;;  %v113_v31 = vld [vmem:[#allocation2 + $0x120] sm:$0xff]  ;;  %v114_v33 = vld [vmem:[#allocation2 + $0x128] sm:$0xff] }
  0x41   :  { %1631 = vmatprep.subr.bf16.mxu0 %v4410_v20  ;;  %1713 = vmatprep.subr.bf16.mxu1 %v4412_v21  ;;  %v4426_v36 = vcombine.high %v109_v30, %v113_v31  ;;  %v4428_v37 = vcombine.high %v110_v32, %v114_v33  ;;  %v117_v38 = vld [vmem:[#allocation2 + $0x140] sm:$0xff]  ;;  %v118_v40 = vld [vmem:[#allocation2 + $0x148] sm:$0xff]  ;;  %v4425_v42 = vcombine.low %v109_v30, %v113_v31 }
  0x42   :  { %v121_v39 = vld [vmem:[#allocation2 + $0x160] sm:$0xff]  ;;  %v122_v41 = vld [vmem:[#allocation2 + $0x168] sm:$0xff]  ;;  %v4427_v43 = vcombine.low %v110_v32, %v114_v33 }
  0x43   :  { %v4434_v44 = vcombine.high %v117_v38, %v121_v39  ;;  %v4436_v45 = vcombine.high %v118_v40, %v122_v41  ;;  %v125_v46 = vld [vmem:[#allocation2 + $0x180] sm:$0xff]  ;;  %v126_v48 = vld [vmem:[#allocation2 + $0x188] sm:$0xff]  ;;  %v4433_v50 = vcombine.low %v117_v38, %v121_v39  ;;  %v4435_v51 = vcombine.low %v118_v40, %v122_v41 }
  0x44   :  { %1632 = vmatpush1.bf16.msra.mxu0 %v4409_v26  ;;  %1714 = vmatpush1.bf16.msra.mxu1 %v4411_v27  ;;  %v129_v47 = vld [vmem:[#allocation2 + $0x1a0] sm:$0xff]  ;;  %v130_v49 = vld [vmem:[#allocation2 + $0x1a8] sm:$0xff] }
  0x45   :  { %1633 = vmatprep.subr.bf16.mxu0 %v4418_v28  ;;  %1715 = vmatprep.subr.bf16.mxu1 %v4420_v29  ;;  %v4442_v52 = vcombine.high %v125_v46, %v129_v47  ;;  %v69_v53 = vld [vmem:[%s5709_s0] sm:$0xff]  ;;  %v4444_v54 = vcombine.high %v126_v48, %v130_v49  ;;  %v134_v58 = vld [vmem:[#allocation2 + $0x1c8] sm:$0xff]  ;;  %v4441_v60 = vcombine.low %v125_v46, %v129_v47 }
  0x46   :  { %v133_v55 = vld [vmem:[#allocation2 + $0x1c0] sm:$0xff]  ;;  %vm71_vm0 = vcmp.ge.bf16.partialorder %v69_v53, 0  ;;  %v73_v57 = vmul.bf16 1009007652, %v69_v53  ;;  %v138_v59 = vld [vmem:[#allocation2 + $0x1e8] sm:$0xff]  ;;  %v4443_v62 = vcombine.low %v126_v48, %v130_v49 }
  0x47   :  { %v137_v56 = vld [vmem:[#allocation2 + $0x1e0] sm:$0xff]  ;;  %v4452_v1 = vcombine.high %v134_v58, %v138_v59  ;;  %v142_v4 = vld [vmem:[#allocation2 + $0x208] sm:$0xff]  ;;  %v4451_v7 = vcombine.low %v134_v58, %v138_v59 }
  0x48   :  { %1634 = vmatpush1.bf16.msra.mxu0 %v4417_v34  ;;  %1716 = vmatpush1.bf16.msra.mxu1 %v4419_v35  ;;  %v5608_v61 = vsel %vm71_vm0, %v69_v53, %v73_v57  ;;  %v4450_v63 = vcombine.high %v133_v55, %v137_v56  ;;  %v141_v2 = vld [vmem:[#allocation2 + $0x200] sm:$0xff]  ;;  %v146_v5 = vld [vmem:[#allocation2 + $0x228] sm:$0xff]  ;;  %v4449_v6 = vcombine.low %v133_v55, %v137_v56 }
  0x49   :  { %1635 = vmatprep.subr.bf16.mxu0 %v4426_v36  ;;  %1717 = vmatprep.subr.bf16.mxu1 %v4428_v37  ;;  %v5612_v0 = vcombine.high %v5608_v61, %v5608_v61  ;;  %v145_v3 = vld [vmem:[#allocation2 + $0x220] sm:$0xff]  ;;  %v4460_v9 = vcombine.high %v142_v4, %v146_v5  ;;  %v150_v12 = vld [vmem:[#allocation2 + $0x248] sm:$0xff]  ;;  %v4459_v15 = vcombine.low %v142_v4, %v146_v5 }
  0x4a   :  { %v4458_v8 = vcombine.high %v141_v2, %v145_v3  ;;  %v149_v10 = vld [vmem:[#allocation2 + $0x240] sm:$0xff]  ;;  %v154_v13 = vld [vmem:[#allocation2 + $0x268] sm:$0xff]  ;;  %v4457_v14 = vcombine.low %v141_v2, %v145_v3 }
  0x4b   :  { %1659 = vmatprep.mubr.bf16.mxu0 %v5612_v0  ;;  %1741 = vmatprep.mubr.bf16.mxu1 %v5612_v0  ;;  %v153_v11 = vld [vmem:[#allocation2 + $0x260] sm:$0xff]  ;;  %v4468_v17 = vcombine.high %v150_v12, %v154_v13  ;;  %v158_v20 = vld [vmem:[#allocation2 + $0x288] sm:$0xff]  ;;  %v4467_v23 = vcombine.low %v150_v12, %v154_v13 }
  0x4c   :  { %1636 = vmatpush1.bf16.msra.mxu0 %v4425_v42  ;;  %1718 = vmatpush1.bf16.msra.mxu1 %v4427_v43  ;;  %v4466_v16 = vcombine.high %v149_v10, %v153_v11  ;;  %v157_v18 = vld [vmem:[#allocation2 + $0x280] sm:$0xff]  ;;  %v162_v21 = vld [vmem:[#allocation2 + $0x2a8] sm:$0xff]  ;;  %v4465_v22 = vcombine.low %v149_v10, %v153_v11 }
  0x4d   :  { %1637 = vmatprep.subr.bf16.mxu0 %v4434_v44  ;;  %1719 = vmatprep.subr.bf16.mxu1 %v4436_v45  ;;  %v161_v19 = vld [vmem:[#allocation2 + $0x2a0] sm:$0xff]  ;;  %v4476_v25 = vcombine.high %v158_v20, %v162_v21  ;;  %v166_v28 = vld [vmem:[#allocation2 + $0x2c8] sm:$0xff]  ;;  %v4475_v31 = vcombine.low %v158_v20, %v162_v21 }
  0x4e   :  { %v4474_v24 = vcombine.high %v157_v18, %v161_v19  ;;  %v165_v26 = vld [vmem:[#allocation2 + $0x2c0] sm:$0xff]  ;;  %v170_v29 = vld [vmem:[#allocation2 + $0x2e8] sm:$0xff]  ;;  %v4473_v30 = vcombine.low %v157_v18, %v161_v19 }
  0x4f   :  { %v169_v27 = vld [vmem:[#allocation2 + $0x2e0] sm:$0xff]  ;;  %v4484_v33 = vcombine.high %v166_v28, %v170_v29  ;;  %v174_v36 = vld [vmem:[#allocation2 + $0x308] sm:$0xff]  ;;  %v4483_v39 = vcombine.low %v166_v28, %v170_v29 }
  0x50   :  { %1638 = vmatpush1.bf16.msra.mxu0 %v4433_v50  ;;  %1720 = vmatpush1.bf16.msra.mxu1 %v4435_v51  ;;  %v4482_v32 = vcombine.high %v165_v26, %v169_v27  ;;  %v173_v34 = vld [vmem:[#allocation2 + $0x300] sm:$0xff]  ;;  %v178_v37 = vld [vmem:[#allocation2 + $0x328] sm:$0xff]  ;;  %v4481_v38 = vcombine.low %v165_v26, %v169_v27 }
  0x51   :  { %1639 = vmatprep.subr.bf16.mxu0 %v4442_v52  ;;  %1721 = vmatprep.subr.bf16.mxu1 %v4444_v54  ;;  %v177_v35 = vld [vmem:[#allocation2 + $0x320] sm:$0xff]  ;;  %v4492_v41 = vcombine.high %v174_v36, %v178_v37  ;;  %v182_v44 = vld [vmem:[#allocation2 + $0x348] sm:$0xff]  ;;  %v4491_v47 = vcombine.low %v174_v36, %v178_v37 }
  0x52   :  { %v4490_v40 = vcombine.high %v173_v34, %v177_v35  ;;  %v181_v42 = vld [vmem:[#allocation2 + $0x340] sm:$0xff]  ;;  %v186_v45 = vld [vmem:[#allocation2 + $0x368] sm:$0xff]  ;;  %v4489_v46 = vcombine.low %v173_v34, %v177_v35 }
  0x53   :  { %v185_v43 = vld [vmem:[#allocation2 + $0x360] sm:$0xff]  ;;  %v4500_v49 = vcombine.high %v182_v44, %v186_v45  ;;  %v190_v52 = vld [vmem:[#allocation2 + $0x388] sm:$0xff]  ;;  %v4499_v55 = vcombine.low %v182_v44, %v186_v45 }
  0x54   :  { %1640 = vmatpush1.bf16.msra.mxu0 %v4441_v60  ;;  %1722 = vmatpush1.bf16.msra.mxu1 %v4443_v62  ;;  %v4498_v48 = vcombine.high %v181_v42, %v185_v43  ;;  %v189_v50 = vld [vmem:[#allocation2 + $0x380] sm:$0xff]  ;;  %v194_v53 = vld [vmem:[#allocation2 + $0x3a8] sm:$0xff]  ;;  %v4497_v54 = vcombine.low %v181_v42, %v185_v43 }
  0x55   :  { %1641 = vmatprep.subr.bf16.mxu0 %v4450_v63  ;;  %1723 = vmatprep.subr.bf16.mxu1 %v4452_v1  ;;  %v193_v51 = vld [vmem:[#allocation2 + $0x3a0] sm:$0xff]  ;;  %v4508_v57 = vcombine.high %v190_v52, %v194_v53  ;;  %v198_v60 = vld [vmem:[#allocation2 + $0x3c8] sm:$0xff]  ;;  %v4507_v2 = vcombine.low %v190_v52, %v194_v53 }
  0x56   :  { %v4506_v56 = vcombine.high %v189_v50, %v193_v51  ;;  %v197_v58 = vld [vmem:[#allocation2 + $0x3c0] sm:$0xff]  ;;  %v202_v62 = vld [vmem:[#allocation2 + $0x3e8] sm:$0xff]  ;;  %v4505_v63 = vcombine.low %v189_v50, %v193_v51 }
  0x57   :  { %v201_v59 = vld [vmem:[#allocation2 + $0x3e0] sm:$0xff]  ;;  %v70_v1 = vld [vmem:[%s5709_s0 + $0x8] sm:$0xff]  ;;  %v4516_v4 = vcombine.high %v198_v60, %v202_v62  ;;  %v4515_v11 = vcombine.low %v198_v60, %v202_v62 }
  0x58   :  { %1642 = vmatpush1.bf16.msra.mxu0 %v4449_v6  ;;  %1724 = vmatpush1.bf16.msra.mxu1 %v4451_v7  ;;  %v4514_v3 = vcombine.high %v197_v58, %v201_v59  ;;  %v205_v5 = vld [vmem:[#allocation2 + $0x400] sm:$0xff]  ;;  %v206_v7 = vld [vmem:[#allocation2 + $0x408] sm:$0xff]  ;;  %v4513_v10 = vcombine.low %v197_v58, %v201_v59  ;;  %vm72_vm1 = vcmp.ge.bf16.partialorder %v70_v1, 0 }
  0x59   :  { %1643 = vmatprep.subr.bf16.mxu0 %v4458_v8  ;;  %1725 = vmatprep.subr.bf16.mxu1 %v4460_v9  ;;  %v209_v6 = vld [vmem:[#allocation2 + $0x420] sm:$0xff]  ;;  %v210_v8 = vld [vmem:[#allocation2 + $0x428] sm:$0xff]  ;;  %v74_v9 = vmul.bf16 1009007652, %v70_v1 }
  0x5a   :  { %v4522_v12 = vcombine.high %v205_v5, %v209_v6  ;;  %v4524_v13 = vcombine.high %v206_v7, %v210_v8  ;;  %v218_v18 = vld [vmem:[#allocation2 + $0x468] sm:$0xff]  ;;  %v4521_v20 = vcombine.low %v205_v5, %v209_v6  ;;  %v4523_v21 = vcombine.low %v206_v7, %v210_v8 }
  0x5b   :  { %v5623_v19 = vsel %vm72_vm1, %v70_v1, %v74_v9  ;;  %v226_v27 = vld [vmem:[#allocation2 + $0x4a8] sm:$0xff]  ;;  %v261_v1 = vld [vmem:[#allocation2 + $0x5c0] sm:$0xff] }
  0x5c   :  { %1644 = vmatpush1.bf16.msra.mxu0 %v4457_v14  ;;  %1726 = vmatpush1.bf16.msra.mxu1 %v4459_v15  ;;  %v213_v14 = vld [vmem:[#allocation2 + $0x440] sm:$0xff]  ;;  %v234_v35 = vld [vmem:[#allocation2 + $0x4e8] sm:$0xff] }
  0x5d   :  { %1645 = vmatprep.subr.bf16.mxu0 %v4466_v16  ;;  %1727 = vmatprep.subr.bf16.mxu1 %v4468_v17  ;;  %v217_v15 = vld [vmem:[#allocation2 + $0x460] sm:$0xff]  ;;  %v5621_v16 = vcombine.low %v5608_v61, %v5608_v61  ;;  %v214_v17 = vld [vmem:[#allocation2 + $0x448] sm:$0xff]  ;;  %v5627_v61 = vcombine.high %v5623_v19, %v5623_v19 }
  0x5e   :  { %v4532_v26 = vcombine.high %v214_v17, %v218_v18  ;;  %v4529_v28 = vcombine.low %v213_v14, %v217_v15  ;;  %v4531_v29 = vcombine.low %v214_v17, %v218_v18  ;;  %v242_v43 = vld [vmem:[#allocation2 + $0x528] sm:$0xff]  ;;  %v269_v9 = vld [vmem:[#allocation2 + $0x600] sm:$0xff] }
  0x5f   :  { %v250_v51 = vld [vmem:[#allocation2 + $0x568] sm:$0xff]  ;;  %v277_v18 = vld [vmem:[#allocation2 + $0x640] sm:$0xff] }
  0x60   :  { %1646 = vmatpush1.bf16.msra.mxu0 %v4465_v22  ;;  %1728 = vmatpush1.bf16.msra.mxu1 %v4467_v23  ;;  %v4530_v22 = vcombine.high %v213_v14, %v217_v15  ;;  %v221_v23 = vld [vmem:[#allocation2 + $0x480] sm:$0xff]  ;;  %v258_v59 = vld [vmem:[#allocation2 + $0x5a8] sm:$0xff] }
  0x61   :  { %1647 = vmatprep.subr.bf16.mxu0 %v4474_v24  ;;  %1729 = vmatprep.subr.bf16.mxu1 %v4476_v25  ;;  %v225_v24 = vld [vmem:[#allocation2 + $0x4a0] sm:$0xff]  ;;  %v222_v25 = vld [vmem:[#allocation2 + $0x488] sm:$0xff] }
  0x62   :  { %v4540_v34 = vcombine.high %v222_v25, %v226_v27  ;;  %v4537_v36 = vcombine.low %v221_v23, %v225_v24  ;;  %v4539_v37 = vcombine.low %v222_v25, %v226_v27  ;;  %v266_v5 = vld [vmem:[#allocation2 + $0x5e8] sm:$0xff]  ;;  %v285_v27 = vld [vmem:[#allocation2 + $0x680] sm:$0xff] }
  0x64   :  { %1648 = vmatpush1.bf16.msra.mxu0 %v4473_v30  ;;  %1730 = vmatpush1.bf16.msra.mxu1 %v4475_v31  ;;  %v4538_v30 = vcombine.high %v221_v23, %v225_v24  ;;  %v229_v31 = vld [vmem:[#allocation2 + $0x4c0] sm:$0xff]  ;;  %v282_v23 = vld [vmem:[#allocation2 + $0x668] sm:$0xff] }
  0x65   :  { %1649 = vmatprep.subr.bf16.mxu0 %v4482_v32  ;;  %1731 = vmatprep.subr.bf16.mxu1 %v4484_v33  ;;  %v233_v32 = vld [vmem:[#allocation2 + $0x4e0] sm:$0xff]  ;;  %v230_v33 = vld [vmem:[#allocation2 + $0x4c8] sm:$0xff] }
  0x66   :  { %v4548_v42 = vcombine.high %v230_v33, %v234_v35  ;;  %v4545_v44 = vcombine.low %v229_v31, %v233_v32  ;;  %v4547_v45 = vcombine.low %v230_v33, %v234_v35  ;;  %v293_v35 = vld [vmem:[#allocation2 + $0x6c0] sm:$0xff] }
  0x68   :  { %1650 = vmatpush1.bf16.msra.mxu0 %v4481_v38  ;;  %1732 = vmatpush1.bf16.msra.mxu1 %v4483_v39  ;;  %v4546_v38 = vcombine.high %v229_v31, %v233_v32  ;;  %v237_v39 = vld [vmem:[#allocation2 + $0x500] sm:$0xff]  ;;  %v290_v31 = vld [vmem:[#allocation2 + $0x6a8] sm:$0xff] }
  0x69   :  { %1651 = vmatprep.subr.bf16.mxu0 %v4490_v40  ;;  %1733 = vmatprep.subr.bf16.mxu1 %v4492_v41  ;;  %v241_v40 = vld [vmem:[#allocation2 + $0x520] sm:$0xff]  ;;  %v238_v41 = vld [vmem:[#allocation2 + $0x508] sm:$0xff] }
  0x6a   :  { %v4556_v50 = vcombine.high %v238_v41, %v242_v43  ;;  %v4553_v52 = vcombine.low %v237_v39, %v241_v40  ;;  %v4555_v53 = vcombine.low %v238_v41, %v242_v43  ;;  %v301_v43 = vld [vmem:[#allocation2 + $0x700] sm:$0xff] }
  0x6c   :  { %1652 = vmatpush1.bf16.msra.mxu0 %v4489_v46  ;;  %1734 = vmatpush1.bf16.msra.mxu1 %v4491_v47  ;;  %v4554_v46 = vcombine.high %v237_v39, %v241_v40  ;;  %v245_v47 = vld [vmem:[#allocation2 + $0x540] sm:$0xff]  ;;  %v298_v39 = vld [vmem:[#allocation2 + $0x6e8] sm:$0xff] }
  0x6d   :  { %1653 = vmatprep.subr.bf16.mxu0 %v4498_v48  ;;  %1735 = vmatprep.subr.bf16.mxu1 %v4500_v49  ;;  %v249_v48 = vld [vmem:[#allocation2 + $0x560] sm:$0xff]  ;;  %v246_v49 = vld [vmem:[#allocation2 + $0x548] sm:$0xff] }
  0x6e   :  { %v4564_v58 = vcombine.high %v246_v49, %v250_v51  ;;  %v4561_v60 = vcombine.low %v245_v47, %v249_v48  ;;  %v4563_v62 = vcombine.low %v246_v49, %v250_v51  ;;  %v309_v51 = vld [vmem:[#allocation2 + $0x740] sm:$0xff] }
  0x70   :  { %1654 = vmatpush1.bf16.msra.mxu0 %v4497_v54  ;;  %1736 = vmatpush1.bf16.msra.mxu1 %v4499_v55  ;;  %v4562_v54 = vcombine.high %v245_v47, %v249_v48  ;;  %v253_v55 = vld [vmem:[#allocation2 + $0x580] sm:$0xff]  ;;  %v306_v47 = vld [vmem:[#allocation2 + $0x728] sm:$0xff] }
  0x71   :  { %1655 = vmatprep.subr.bf16.mxu0 %v4506_v56  ;;  %1737 = vmatprep.subr.bf16.mxu1 %v4508_v57  ;;  %v257_v56 = vld [vmem:[#allocation2 + $0x5a0] sm:$0xff]  ;;  %v254_v57 = vld [vmem:[#allocation2 + $0x588] sm:$0xff] }
  0x72   :  { %v4569_v6 = vcombine.low %v253_v55, %v257_v56  ;;  %v4571_v7 = vcombine.low %v254_v57, %v258_v59 }
  0x74   :  { %1656 = vmatpush1.bf16.msra.mxu0 %v4505_v63  ;;  %1738 = vmatpush1.bf16.msra.mxu1 %v4507_v2  ;;  %v4570_v63 = vcombine.high %v253_v55, %v257_v56  ;;  %v265_v2 = vld [vmem:[#allocation2 + $0x5e0] sm:$0xff]  ;;  %v314_v55 = vld [vmem:[#allocation2 + $0x768] sm:$0xff] }
  0x75   :  { %1657 = vmatprep.subr.bf16.mxu0 %v4514_v3  ;;  %1739 = vmatprep.subr.bf16.mxu1 %v4516_v4  ;;  %v262_v3 = vld [vmem:[#allocation2 + $0x5c8] sm:$0xff]  ;;  %v4572_v4 = vcombine.high %v254_v57, %v258_v59  ;;  %v4578_v8 = vcombine.high %v261_v1, %v265_v2  ;;  %v4577_v14 = vcombine.low %v261_v1, %v265_v2  ;;  %v317_v59 = vld [vmem:[#allocation2 + $0x780] sm:$0xff] }
  0x76   :  { %v4579_v15 = vcombine.low %v262_v3, %v266_v5  ;;  %v322_v1 = vld [vmem:[#allocation2 + $0x7a8] sm:$0xff] }
  0x78   :  { %1658 = vmatpush1.bf16.msra.mxu0 %v4513_v10  ;;  %1740 = vmatpush1.bf16.msra.mxu1 %v4515_v11  ;;  %v273_v10 = vld [vmem:[#allocation2 + $0x620] sm:$0xff]  ;;  %v270_v11 = vld [vmem:[#allocation2 + $0x608] sm:$0xff] }
  0x79   :  { %1668 = vmatprep.subr.bf16.mxu0 %v4522_v12  ;;  %1750 = vmatprep.subr.bf16.mxu1 %v4524_v13  ;;  %v4580_v12 = vcombine.high %v262_v3, %v266_v5  ;;  %v274_v13 = vld [vmem:[#allocation2 + $0x628] sm:$0xff]  ;;  %v4586_v17 = vcombine.high %v269_v9, %v273_v10  ;;  %v4585_v24 = vcombine.low %v269_v9, %v273_v10  ;;  %v325_v5 = vld [vmem:[#allocation2 + $0x7c0] sm:$0xff] }
  0x7a   :  { %v4587_v25 = vcombine.low %v270_v11, %v274_v13  ;;  %v330_v9 = vld [vmem:[#allocation2 + $0x7e8] sm:$0xff] }
  0x7b   :  { %1660 = vmatmul.mubr.bf16.vlgmr.msra.gmra.mrb[0].mxu0 %v5621_v16  ;;  %1742 = vmatmul.mubr.bf16.vlgmr.msra.gmra.mrb[0].mxu1 %v5621_v16 }
  0x7c   :  { %1669 = vmatpush1.bf16.msra.mxu0 %v4521_v20  ;;  %1751 = vmatpush1.bf16.msra.mxu1 %v4523_v21  ;;  %v281_v20 = vld [vmem:[#allocation2 + $0x660] sm:$0xff]  ;;  %v278_v21 = vld [vmem:[#allocation2 + $0x648] sm:$0xff] }
  0x7d   :  { %1670 = vmatprep.subr.bf16.mxu0 %v4530_v22  ;;  %1752 = vmatprep.subr.bf16.mxu1 %v4532_v26  ;;  %v4588_v22 = vcombine.high %v270_v11, %v274_v13  ;;  %v4594_v26 = vcombine.high %v277_v18, %v281_v20  ;;  %v4593_v32 = vcombine.low %v277_v18, %v281_v20  ;;  %v79_v13 = vld [vmem:[#allocation2 + $0x10] sm:$0xff]  ;;  %v84_v18 = vld [vmem:[#allocation2 + $0x38] sm:$0xff] }
  0x7e   :  { %1700 = vmatprep.mubr.bf16.mxu0 %v5627_v61  ;;  %1782 = vmatprep.mubr.bf16.mxu1 %v5627_v61  ;;  %v4595_v33 = vcombine.low %v278_v21, %v282_v23 }
  0x80   :  { %1671 = vmatpush1.bf16.msra.mxu0 %v4529_v28  ;;  %1753 = vmatpush1.bf16.msra.mxu1 %v4531_v29  ;;  %v289_v28 = vld [vmem:[#allocation2 + $0x6a0] sm:$0xff]  ;;  %v286_v29 = vld [vmem:[#allocation2 + $0x688] sm:$0xff] }
  0x81   :  { %1672 = vmatprep.subr.bf16.mxu0 %v4538_v30  ;;  %1754 = vmatprep.subr.bf16.mxu1 %v4540_v34  ;;  %v4596_v30 = vcombine.high %v278_v21, %v282_v23  ;;  %v4602_v34 = vcombine.high %v285_v27, %v289_v28  ;;  %v4601_v40 = vcombine.low %v285_v27, %v289_v28  ;;  %v87_v23 = vld [vmem:[#allocation2 + $0x50] sm:$0xff]  ;;  %v92_v27 = vld [vmem:[#allocation2 + $0x78] sm:$0xff] }
  0x82   :  { %v4603_v41 = vcombine.low %v286_v29, %v290_v31  ;;  %v5635_v28 = vcombine.low %v5623_v19, %v5623_v19 }
  0x84   :  { %1673 = vmatpush1.bf16.msra.mxu0 %v4537_v36  ;;  %1755 = vmatpush1.bf16.msra.mxu1 %v4539_v37  ;;  %v297_v36 = vld [vmem:[#allocation2 + $0x6e0] sm:$0xff]  ;;  %v294_v37 = vld [vmem:[#allocation2 + $0x6c8] sm:$0xff] }
  0x85   :  { %1674 = vmatprep.subr.bf16.mxu0 %v4546_v38  ;;  %1756 = vmatprep.subr.bf16.mxu1 %v4548_v42  ;;  %v4604_v38 = vcombine.high %v286_v29, %v290_v31  ;;  %v4610_v42 = vcombine.high %v293_v35, %v297_v36  ;;  %v4609_v48 = vcombine.low %v293_v35, %v297_v36  ;;  %v99_v31 = vld [vmem:[#allocation2 + $0xb0] sm:$0xff]  ;;  %v100_v35 = vld [vmem:[#allocation2 + $0xb8] sm:$0xff] }
  0x86   :  { %v4611_v49 = vcombine.low %v294_v37, %v298_v39 }
  0x88   :  { %1675 = vmatpush1.bf16.msra.mxu0 %v4545_v44  ;;  %1757 = vmatpush1.bf16.msra.mxu1 %v4547_v45  ;;  %v305_v44 = vld [vmem:[#allocation2 + $0x720] sm:$0xff]  ;;  %v302_v45 = vld [vmem:[#allocation2 + $0x708] sm:$0xff] }
  0x89   :  { %1676 = vmatprep.subr.bf16.mxu0 %v4554_v46  ;;  %1758 = vmatprep.subr.bf16.mxu1 %v4556_v50  ;;  %v4612_v46 = vcombine.high %v294_v37, %v298_v39  ;;  %v4618_v50 = vcombine.high %v301_v43, %v305_v44  ;;  %v4617_v56 = vcombine.low %v301_v43, %v305_v44  ;;  %v103_v39 = vld [vmem:[#allocation2 + $0xd0] sm:$0xff]  ;;  %v108_v43 = vld [vmem:[#allocation2 + $0xf8] sm:$0xff] }
  0x8a   :  { %v4619_v57 = vcombine.low %v302_v45, %v306_v47 }
  0x8c   :  { %1677 = vmatpush1.bf16.msra.mxu0 %v4553_v52  ;;  %1759 = vmatpush1.bf16.msra.mxu1 %v4555_v53  ;;  %v313_v52 = vld [vmem:[#allocation2 + $0x760] sm:$0xff]  ;;  %v310_v53 = vld [vmem:[#allocation2 + $0x748] sm:$0xff] }
  0x8d   :  { %1678 = vmatprep.subr.bf16.mxu0 %v4562_v54  ;;  %1760 = vmatprep.subr.bf16.mxu1 %v4564_v58  ;;  %v4620_v54 = vcombine.high %v302_v45, %v306_v47  ;;  %v4626_v58 = vcombine.high %v309_v51, %v313_v52  ;;  %v4625_v2 = vcombine.low %v309_v51, %v313_v52  ;;  %v111_v47 = vld [vmem:[#allocation2 + $0x110] sm:$0xff]  ;;  %v116_v51 = vld [vmem:[#allocation2 + $0x138] sm:$0xff] }
  0x8e   :  { %v4627_v3 = vcombine.low %v310_v53, %v314_v55 }
  0x90   :  { %1679 = vmatpush1.bf16.msra.mxu0 %v4561_v60  ;;  %1761 = vmatpush1.bf16.msra.mxu1 %v4563_v62  ;;  %v321_v60 = vld [vmem:[#allocation2 + $0x7a0] sm:$0xff]  ;;  %v318_v62 = vld [vmem:[#allocation2 + $0x788] sm:$0xff] }
  0x91   :  { %1680 = vmatprep.subr.bf16.mxu0 %v4570_v63  ;;  %1762 = vmatprep.subr.bf16.mxu1 %v4572_v4  ;;  %v4628_v63 = vcombine.high %v310_v53, %v314_v55  ;;  %v4634_v4 = vcombine.high %v317_v59, %v321_v60  ;;  %v4633_v10 = vcombine.low %v317_v59, %v321_v60  ;;  %v119_v55 = vld [vmem:[#allocation2 + $0x150] sm:$0xff] }
  0x92   :  { %v4635_v11 = vcombine.low %v318_v62, %v322_v1 }
  0x94   :  { %1681 = vmatpush1.bf16.msra.mxu0 %v4569_v6  ;;  %1763 = vmatpush1.bf16.msra.mxu1 %v4571_v7  ;;  %v329_v6 = vld [vmem:[#allocation2 + $0x7e0] sm:$0xff]  ;;  %v326_v7 = vld [vmem:[#allocation2 + $0x7c8] sm:$0xff] }
  0x95   :  { %1682 = vmatprep.subr.bf16.mxu0 %v4578_v8  ;;  %1764 = vmatprep.subr.bf16.mxu1 %v4580_v12  ;;  %v4636_v8 = vcombine.high %v318_v62, %v322_v1  ;;  %v4642_v12 = vcombine.high %v325_v5, %v329_v6  ;;  %v4641_v20 = vcombine.low %v325_v5, %v329_v6  ;;  %v131_v1 = vld [vmem:[#allocation2 + $0x1b0] sm:$0xff] }
  0x96   :  { %v4643_v21 = vcombine.low %v326_v7, %v330_v9 }
  0x98   :  { %1683 = vmatpush1.bf16.msra.mxu0 %v4577_v14  ;;  %1765 = vmatpush1.bf16.msra.mxu1 %v4579_v15  ;;  %v83_v14 = vld [vmem:[#allocation2 + $0x30] sm:$0xff]  ;;  %v80_v15 = vld [vmem:[#allocation2 + $0x18] sm:$0xff] }
  0x99   :  { %1684 = vmatprep.subr.bf16.mxu0 %v4586_v17  ;;  %1766 = vmatprep.subr.bf16.mxu1 %v4588_v22  ;;  %v4644_v17 = vcombine.high %v326_v7, %v330_v9  ;;  %v4398_v22 = vcombine.high %v79_v13, %v83_v14  ;;  %v4397_v29 = vcombine.low %v79_v13, %v83_v14  ;;  %v139_v9 = vld [vmem:[#allocation2 + $0x1f0] sm:$0xff] }
  0x9c   :  { %1685 = vmatpush1.bf16.msra.mxu0 %v4585_v24  ;;  %1767 = vmatpush1.bf16.msra.mxu1 %v4587_v25  ;;  %v91_v24 = vld [vmem:[#allocation2 + $0x70] sm:$0xff]  ;;  %v88_v25 = vld [vmem:[#allocation2 + $0x58] sm:$0xff] }
  0x9d   :  { %1686 = vmatprep.subr.bf16.mxu0 %v4594_v26  ;;  %1768 = vmatprep.subr.bf16.mxu1 %v4596_v30  ;;  %v4400_v26 = vcombine.high %v80_v15, %v84_v18  ;;  %v95_v30 = vld [vmem:[#allocation2 + $0x90] sm:$0xff]  ;;  %v4408_v36 = vcombine.high %v88_v25, %v92_v27  ;;  %v4405_v37 = vcombine.low %v87_v23, %v91_v24 }
  0x9e   :  { %v4407_v19 = vcombine.low %v88_v25, %v92_v27  ;;  %v4413_v44 = vcombine.low %v95_v30, %v99_v31  ;;  %v155_v27 = vld [vmem:[#allocation2 + $0x270] sm:$0xff] }
  0xa0   :  { %1687 = vmatpush1.bf16.msra.mxu0 %v4593_v32  ;;  %1769 = vmatpush1.bf16.msra.mxu1 %v4595_v33  ;;  %v4399_v32 = vcombine.low %v80_v15, %v84_v18  ;;  %v4406_v33 = vcombine.high %v87_v23, %v91_v24  ;;  %v147_v18 = vld [vmem:[#allocation2 + $0x230] sm:$0xff] }
  0xa1   :  { %1688 = vmatprep.subr.bf16.mxu0 %v4602_v34  ;;  %1770 = vmatprep.subr.bf16.mxu1 %v4604_v38  ;;  %v96_v34 = vld [vmem:[#allocation2 + $0x98] sm:$0xff]  ;;  %v4414_v38 = vcombine.high %v95_v30, %v99_v31 }
  0xa2   :  { %v4415_v45 = vcombine.low %v96_v34, %v100_v35  ;;  %v156_v31 = vld [vmem:[#allocation2 + $0x278] sm:$0xff] }
  0xa4   :  { %1689 = vmatpush1.bf16.msra.mxu0 %v4601_v40  ;;  %1771 = vmatpush1.bf16.msra.mxu1 %v4603_v41  ;;  %v107_v40 = vld [vmem:[#allocation2 + $0xf0] sm:$0xff]  ;;  %v4416_v41 = vcombine.high %v96_v34, %v100_v35 }
  0xa5   :  { %1690 = vmatprep.subr.bf16.mxu0 %v4610_v42  ;;  %1772 = vmatprep.subr.bf16.mxu1 %v4612_v46  ;;  %v104_v42 = vld [vmem:[#allocation2 + $0xd8] sm:$0xff]  ;;  %v4422_v46 = vcombine.high %v103_v39, %v107_v40  ;;  %v4421_v52 = vcombine.low %v103_v39, %v107_v40  ;;  %v159_v35 = vld [vmem:[#allocation2 + $0x290] sm:$0xff] }
  0xa6   :  { %v4423_v53 = vcombine.low %v104_v42, %v108_v43 }
  0xa8   :  { %1691 = vmatpush1.bf16.msra.mxu0 %v4609_v48  ;;  %1773 = vmatpush1.bf16.msra.mxu1 %v4611_v49  ;;  %v115_v48 = vld [vmem:[#allocation2 + $0x130] sm:$0xff]  ;;  %v112_v49 = vld [vmem:[#allocation2 + $0x118] sm:$0xff] }
  0xa9   :  { %1692 = vmatprep.subr.bf16.mxu0 %v4618_v50  ;;  %1774 = vmatprep.subr.bf16.mxu1 %v4620_v54  ;;  %v4424_v50 = vcombine.high %v104_v42, %v108_v43  ;;  %v4430_v54 = vcombine.high %v111_v47, %v115_v48  ;;  %v4429_v59 = vcombine.low %v111_v47, %v115_v48  ;;  %v167_v42 = vld [vmem:[#allocation2 + $0x2d0] sm:$0xff] }
  0xaa   :  { %v4431_v60 = vcombine.low %v112_v49, %v116_v51  ;;  %v171_v43 = vld [vmem:[#allocation2 + $0x2f0] sm:$0xff] }
  0xac   :  { %1693 = vmatpush1.bf16.msra.mxu0 %v4617_v56  ;;  %1775 = vmatpush1.bf16.msra.mxu1 %v4619_v57  ;;  %v120_v56 = vld [vmem:[#allocation2 + $0x158] sm:$0xff]  ;;  %v4432_v57 = vcombine.high %v112_v49, %v116_v51  ;;  %v4486_v49 = vcombine.high %v167_v42, %v171_v43  ;;  %v179_v51 = vld [vmem:[#allocation2 + $0x330] sm:$0xff] }
  0xad   :  { %1694 = vmatprep.subr.bf16.mxu0 %v4626_v58  ;;  %1776 = vmatprep.subr.bf16.mxu1 %v4628_v63  ;;  %v124_v58 = vld [vmem:[#allocation2 + $0x178] sm:$0xff]  ;;  %v127_v63 = vld [vmem:[#allocation2 + $0x190] sm:$0xff] }
  0xae   :  { %v4439_v6 = vcombine.low %v120_v56, %v124_v58  ;;  %v4446_v7 = vcombine.high %v127_v63, %v131_v1  ;;  %v4445_v13 = vcombine.low %v127_v63, %v131_v1 }
  0xb0   :  { %1695 = vmatpush1.bf16.msra.mxu0 %v4625_v2  ;;  %1777 = vmatpush1.bf16.msra.mxu1 %v4627_v3  ;;  %v128_v2 = vld [vmem:[#allocation2 + $0x198] sm:$0xff]  ;;  %v4440_v3 = vcombine.high %v120_v56, %v124_v58  ;;  %v187_v58 = vld [vmem:[#allocation2 + $0x370] sm:$0xff] }
  0xb1   :  { %1696 = vmatprep.subr.bf16.mxu0 %v4634_v4  ;;  %1778 = vmatprep.subr.bf16.mxu1 %v4636_v8  ;;  %v132_v4 = vld [vmem:[#allocation2 + $0x1b8] sm:$0xff]  ;;  %v135_v8 = vld [vmem:[#allocation2 + $0x1d0] sm:$0xff] }
  0xb2   :  { %v4447_v14 = vcombine.low %v128_v2, %v132_v4  ;;  %v4454_v15 = vcombine.high %v135_v8, %v139_v9  ;;  %v4453_v23 = vcombine.low %v135_v8, %v139_v9 }
  0xb4   :  { %1697 = vmatpush1.bf16.msra.mxu0 %v4633_v10  ;;  %1779 = vmatpush1.bf16.msra.mxu1 %v4635_v11  ;;  %v136_v10 = vld [vmem:[#allocation2 + $0x1d8] sm:$0xff]  ;;  %v4448_v11 = vcombine.high %v128_v2, %v132_v4  ;;  %v195_v4 = vld [vmem:[#allocation2 + $0x3b0] sm:$0xff] }
  0xb5   :  { %1698 = vmatprep.subr.bf16.mxu0 %v4642_v12  ;;  %1780 = vmatprep.subr.bf16.mxu1 %v4644_v17  ;;  %v140_v12 = vld [vmem:[#allocation2 + $0x1f8] sm:$0xff]  ;;  %v143_v17 = vld [vmem:[#allocation2 + $0x210] sm:$0xff] }
  0xb6   :  { %v4455_v24 = vcombine.low %v136_v10, %v140_v12  ;;  %v4462_v25 = vcombine.high %v143_v17, %v147_v18 }
  0xb8   :  { %1699 = vmatpush1.bf16.msra.mxu0 %v4641_v20  ;;  %1781 = vmatpush1.bf16.msra.mxu1 %v4643_v21  ;;  %v144_v20 = vld [vmem:[#allocation2 + $0x218] sm:$0xff]  ;;  %v4456_v21 = vcombine.high %v136_v10, %v140_v12  ;;  %v203_v12 = vld [vmem:[#allocation2 + $0x3f0] sm:$0xff] }
  0xb9   :  { %1791 = vmatprep.subr.bf16.mxu0 %v4398_v22  ;;  %1873 = vmatprep.subr.bf16.mxu1 %v4400_v26  ;;  %v148_v22 = vld [vmem:[#allocation2 + $0x238] sm:$0xff]  ;;  %v151_v26 = vld [vmem:[#allocation2 + $0x250] sm:$0xff] }
  0xba   :  { %v4464_v30 = vcombine.high %v144_v20, %v148_v22  ;;  %v4470_v34 = vcombine.high %v151_v26, %v155_v27  ;;  %v4469_v39 = vcombine.low %v151_v26, %v155_v27  ;;  %v215_v27 = vld [vmem:[#allocation2 + $0x450] sm:$0xff] }
  0xbb   :  { %1701 = vmatmul.mubr.bf16.vlgmr.msra.gmra.mrb[0].mxu0 %v5635_v28  ;;  %1783 = vmatmul.mubr.bf16.vlgmr.msra.gmra.mrb[0].mxu1 %v5635_v28 }
  0xbc   :  { %1792 = vmatpush1.bf16.msra.mxu0 %v4397_v29  ;;  %1874 = vmatpush1.bf16.msra.mxu1 %v4399_v32  ;;  %v152_v29 = vld [vmem:[#allocation2 + $0x258] sm:$0xff]  ;;  %v4461_v32 = vcombine.low %v143_v17, %v147_v18  ;;  %v207_v18 = vld [vmem:[#allocation2 + $0x410] sm:$0xff] }
  0xbd   :  { %1793 = vmatprep.subr.bf16.mxu0 %v4406_v33  ;;  %1875 = vmatprep.subr.bf16.mxu1 %v4408_v36  ;;  %v4463_v33 = vcombine.low %v144_v20, %v148_v22  ;;  %v163_v36 = vld [vmem:[#allocation2 + $0x2b0] sm:$0xff]  ;;  %v4471_v40 = vcombine.low %v152_v29, %v156_v31 }
  0xbe   :  { %1823 = vmatprep.mubr.bf16.mxu0 %v5612_v0  ;;  %1905 = vmatprep.mubr.bf16.mxu1 %v5612_v0  ;;  %v123_v0 = vld [vmem:[#allocation2 + $0x170] sm:$0xff]  ;;  %v4477_v47 = vcombine.low %v159_v35, %v163_v36 }
  0xbf   :  { %v4438_v62 = vcombine.high %v119_v55, %v123_v0  ;;  %v4437_v5 = vcombine.low %v119_v55, %v123_v0  ;;  %v4485_v55 = vcombine.low %v167_v42, %v171_v43  ;;  %v211_v20 = vld [vmem:[#allocation2 + $0x430] sm:$0xff] }
  0xc0   :  { %1794 = vmatpush1.bf16.msra.mxu0 %v4405_v37  ;;  %1876 = vmatpush1.bf16.msra.mxu1 %v4407_v19  ;;  %v160_v37 = vld [vmem:[#allocation2 + $0x298] sm:$0xff]  ;;  %v4472_v19 = vcombine.high %v152_v29, %v156_v31  ;;  %v219_v29 = vld [vmem:[#allocation2 + $0x470] sm:$0xff]  ;;  %v4526_v31 = vcombine.high %v207_v18, %v211_v20 }
  0xc1   :  { %1795 = vmatprep.subr.bf16.mxu0 %v4414_v38  ;;  %1877 = vmatprep.subr.bf16.mxu1 %v4416_v41  ;;  %v164_v38 = vld [vmem:[#allocation2 + $0x2b8] sm:$0xff]  ;;  %v4478_v41 = vcombine.high %v159_v35, %v163_v36  ;;  %v4525_v35 = vcombine.low %v207_v18, %v211_v20  ;;  %v223_v36 = vld [vmem:[#allocation2 + $0x490] sm:$0xff]  ;;  %v4533_v42 = vcombine.low %v215_v27, %v219_v29 }
  0xc2   :  { %v4479_v48 = vcombine.low %v160_v37, %v164_v38  ;;  %v231_v43 = vld [vmem:[#allocation2 + $0x4d0] sm:$0xff] }
  0xc4   :  { %1796 = vmatpush1.bf16.msra.mxu0 %v4413_v44  ;;  %1878 = vmatpush1.bf16.msra.mxu1 %v4415_v45  ;;  %v168_v44 = vld [vmem:[#allocation2 + $0x2d8] sm:$0xff]  ;;  %v4480_v45 = vcombine.high %v160_v37, %v164_v38  ;;  %v227_v37 = vld [vmem:[#allocation2 + $0x4b0] sm:$0xff]  ;;  %v4534_v38 = vcombine.high %v215_v27, %v219_v29 }
  0xc5   :  { %1797 = vmatprep.subr.bf16.mxu0 %v4422_v46  ;;  %1879 = vmatprep.subr.bf16.mxu1 %v4424_v50  ;;  %v172_v46 = vld [vmem:[#allocation2 + $0x2f8] sm:$0xff]  ;;  %v175_v50 = vld [vmem:[#allocation2 + $0x310] sm:$0xff] }
  0xc6   :  { %v4487_v0 = vcombine.low %v168_v44, %v172_v46  ;;  %v4494_v56 = vcombine.high %v175_v50, %v179_v51  ;;  %v4493_v63 = vcombine.low %v175_v50, %v179_v51  ;;  %v4541_v50 = vcombine.low %v223_v36, %v227_v37  ;;  %v239_v51 = vld [vmem:[#allocation2 + $0x510] sm:$0xff] }
  0xc8   :  { %1798 = vmatpush1.bf16.msra.mxu0 %v4421_v52  ;;  %1880 = vmatpush1.bf16.msra.mxu1 %v4423_v53  ;;  %v176_v52 = vld [vmem:[#allocation2 + $0x318] sm:$0xff]  ;;  %v4488_v53 = vcombine.high %v168_v44, %v172_v46  ;;  %v235_v44 = vld [vmem:[#allocation2 + $0x4f0] sm:$0xff]  ;;  %v4542_v46 = vcombine.high %v223_v36, %v227_v37 }
  0xc9   :  { %1799 = vmatprep.subr.bf16.mxu0 %v4430_v54  ;;  %1881 = vmatprep.subr.bf16.mxu1 %v4432_v57  ;;  %v180_v54 = vld [vmem:[#allocation2 + $0x338] sm:$0xff]  ;;  %v183_v57 = vld [vmem:[#allocation2 + $0x350] sm:$0xff] }
  0xca   :  { %v4495_v1 = vcombine.low %v176_v52, %v180_v54  ;;  %v4502_v2 = vcombine.high %v183_v57, %v187_v58  ;;  %v4501_v8 = vcombine.low %v183_v57, %v187_v58  ;;  %v247_v57 = vld [vmem:[#allocation2 + $0x550] sm:$0xff] }
  0xcb   :  { %v251_v58 = vld [vmem:[#allocation2 + $0x570] sm:$0xff] }
  0xcc   :  { %1800 = vmatpush1.bf16.msra.mxu0 %v4429_v59  ;;  %1882 = vmatpush1.bf16.msra.mxu1 %v4431_v60  ;;  %v184_v59 = vld [vmem:[#allocation2 + $0x358] sm:$0xff]  ;;  %v4496_v60 = vcombine.high %v176_v52, %v180_v54  ;;  %v243_v52 = vld [vmem:[#allocation2 + $0x530] sm:$0xff] }
  0xcd   :  { %1801 = vmatprep.subr.bf16.mxu0 %v4438_v62  ;;  %1883 = vmatprep.subr.bf16.mxu1 %v4440_v3  ;;  %v188_v62 = vld [vmem:[#allocation2 + $0x378] sm:$0xff]  ;;  %v191_v3 = vld [vmem:[#allocation2 + $0x390] sm:$0xff] }
  0xce   :  { %v4503_v9 = vcombine.low %v184_v59, %v188_v62  ;;  %v4510_v10 = vcombine.high %v191_v3, %v195_v4  ;;  %v4509_v17 = vcombine.low %v191_v3, %v195_v4  ;;  %v240_v54 = vld [vmem:[#allocation2 + $0x518] sm:$0xff]  ;;  %v259_v3 = vld [vmem:[#allocation2 + $0x5b0] sm:$0xff] }
  0xd0   :  { %1802 = vmatpush1.bf16.msra.mxu0 %v4437_v5  ;;  %1884 = vmatpush1.bf16.msra.mxu1 %v4439_v6  ;;  %v192_v5 = vld [vmem:[#allocation2 + $0x398] sm:$0xff]  ;;  %v4504_v6 = vcombine.high %v184_v59, %v188_v62 }
  0xd1   :  { %1803 = vmatprep.subr.bf16.mxu0 %v4446_v7  ;;  %1885 = vmatprep.subr.bf16.mxu1 %v4448_v11  ;;  %v196_v7 = vld [vmem:[#allocation2 + $0x3b8] sm:$0xff]  ;;  %v199_v11 = vld [vmem:[#allocation2 + $0x3d0] sm:$0xff] }
  0xd2   :  { %v4518_v22 = vcombine.high %v199_v11, %v203_v12  ;;  %v4517_v26 = vcombine.low %v199_v11, %v203_v12 }
  0xd4   :  { %1804 = vmatpush1.bf16.msra.mxu0 %v4445_v13  ;;  %1886 = vmatpush1.bf16.msra.mxu1 %v4447_v14  ;;  %v200_v13 = vld [vmem:[#allocation2 + $0x3d8] sm:$0xff]  ;;  %v4512_v14 = vcombine.high %v192_v5, %v196_v7 }
  0xd5   :  { %1805 = vmatprep.subr.bf16.mxu0 %v4454_v15  ;;  %1887 = vmatprep.subr.bf16.mxu1 %v4456_v21  ;;  %v204_v15 = vld [vmem:[#allocation2 + $0x3f8] sm:$0xff]  ;;  %v4511_v21 = vcombine.low %v192_v5, %v196_v7  ;;  %v4566_v5 = vcombine.high %v247_v57, %v251_v58 }
  0xd6   :  { %v260_v7 = vld [vmem:[#allocation2 + $0x5b8] sm:$0xff] }
  0xd8   :  { %1806 = vmatpush1.bf16.msra.mxu0 %v4453_v23  ;;  %1888 = vmatpush1.bf16.msra.mxu1 %v4455_v24  ;;  %v208_v23 = vld [vmem:[#allocation2 + $0x418] sm:$0xff] }
  0xd9   :  { %1807 = vmatprep.subr.bf16.mxu0 %v4462_v25  ;;  %1889 = vmatprep.subr.bf16.mxu1 %v4464_v30  ;;  %v212_v24 = vld [vmem:[#allocation2 + $0x438] sm:$0xff]  ;;  %v4520_v25 = vcombine.high %v200_v13, %v204_v15  ;;  %v4519_v30 = vcombine.low %v200_v13, %v204_v15  ;;  %v263_v13 = vld [vmem:[#allocation2 + $0x5d0] sm:$0xff] }
  0xda   :  { %v264_v15 = vld [vmem:[#allocation2 + $0x5d8] sm:$0xff] }
  0xdc   :  { %1808 = vmatpush1.bf16.msra.mxu0 %v4461_v32  ;;  %1890 = vmatpush1.bf16.msra.mxu1 %v4463_v33  ;;  %v216_v32 = vld [vmem:[#allocation2 + $0x458] sm:$0xff] }
  0xdd   :  { %1809 = vmatprep.subr.bf16.mxu0 %v4470_v34  ;;  %1891 = vmatprep.subr.bf16.mxu1 %v4472_v19  ;;  %v220_v33 = vld [vmem:[#allocation2 + $0x478] sm:$0xff]  ;;  %v4528_v34 = vcombine.high %v208_v23, %v212_v24  ;;  %v4527_v19 = vcombine.low %v208_v23, %v212_v24  ;;  %v271_v23 = vld [vmem:[#allocation2 + $0x610] sm:$0xff] }
  0xde   :  { %v275_v24 = vld [vmem:[#allocation2 + $0x630] sm:$0xff] }
  0xdf   :  { %v4589_v36 = vcombine.low %v271_v23, %v275_v24 }
  0xe0   :  { %1810 = vmatpush1.bf16.msra.mxu0 %v4469_v39  ;;  %1892 = vmatpush1.bf16.msra.mxu1 %v4471_v40  ;;  %v224_v39 = vld [vmem:[#allocation2 + $0x498] sm:$0xff] }
  0xe1   :  { %1811 = vmatprep.subr.bf16.mxu0 %v4478_v41  ;;  %1893 = vmatprep.subr.bf16.mxu1 %v4480_v45  ;;  %v228_v40 = vld [vmem:[#allocation2 + $0x4b8] sm:$0xff]  ;;  %v4536_v41 = vcombine.high %v216_v32, %v220_v33  ;;  %v4535_v45 = vcombine.low %v216_v32, %v220_v33  ;;  %v279_v32 = vld [vmem:[#allocation2 + $0x650] sm:$0xff] }
  0xe2   :  { %v283_v33 = vld [vmem:[#allocation2 + $0x670] sm:$0xff] }
  0xe4   :  { %1812 = vmatpush1.bf16.msra.mxu0 %v4477_v47  ;;  %1894 = vmatpush1.bf16.msra.mxu1 %v4479_v48  ;;  %v232_v47 = vld [vmem:[#allocation2 + $0x4d8] sm:$0xff] }
  0xe5   :  { %1813 = vmatprep.subr.bf16.mxu0 %v4486_v49  ;;  %1895 = vmatprep.subr.bf16.mxu1 %v4488_v53  ;;  %v236_v48 = vld [vmem:[#allocation2 + $0x4f8] sm:$0xff]  ;;  %v4544_v49 = vcombine.high %v224_v39, %v228_v40  ;;  %v4550_v53 = vcombine.high %v231_v43, %v235_v44 }
  0xe6   :  { %v4551_v59 = vcombine.low %v232_v47, %v236_v48 }
  0xe8   :  { %1814 = vmatpush1.bf16.msra.mxu0 %v4485_v55  ;;  %1896 = vmatpush1.bf16.msra.mxu1 %v4487_v0  ;;  %v4552_v55 = vcombine.high %v232_v47, %v236_v48  ;;  %v244_v0 = vld [vmem:[#allocation2 + $0x538] sm:$0xff]  ;;  %v295_v47 = vld [vmem:[#allocation2 + $0x6d0] sm:$0xff] }
  0xe9   :  { %1815 = vmatprep.subr.bf16.mxu0 %v4494_v56  ;;  %1897 = vmatprep.subr.bf16.mxu1 %v4496_v60  ;;  %v4549_v56 = vcombine.low %v231_v43, %v235_v44  ;;  %v248_v60 = vld [vmem:[#allocation2 + $0x558] sm:$0xff]  ;;  %v4560_v62 = vcombine.high %v240_v54, %v244_v0  ;;  %v4559_v4 = vcombine.low %v240_v54, %v244_v0  ;;  %v299_v48 = vld [vmem:[#allocation2 + $0x6f0] sm:$0xff] }
  0xea   :  { %v4597_v43 = vcombine.low %v279_v32, %v283_v33  ;;  %v303_v54 = vld [vmem:[#allocation2 + $0x710] sm:$0xff]  ;;  %v304_v0 = vld [vmem:[#allocation2 + $0x718] sm:$0xff] }
  0xec   :  { %1816 = vmatpush1.bf16.msra.mxu0 %v4493_v63  ;;  %1898 = vmatpush1.bf16.msra.mxu1 %v4495_v1  ;;  %v252_v63 = vld [vmem:[#allocation2 + $0x578] sm:$0xff]  ;;  %v4557_v1 = vcombine.low %v239_v51, %v243_v52 }
  0xed   :  { %1817 = vmatprep.subr.bf16.mxu0 %v4502_v2  ;;  %1899 = vmatprep.subr.bf16.mxu1 %v4504_v6  ;;  %v255_v2 = vld [vmem:[#allocation2 + $0x590] sm:$0xff]  ;;  %v256_v6 = vld [vmem:[#allocation2 + $0x598] sm:$0xff] }
  0xee   :  { %v4574_v11 = vcombine.high %v255_v2, %v259_v3  ;;  %v4576_v12 = vcombine.high %v256_v6, %v260_v7  ;;  %v4573_v18 = vcombine.low %v255_v2, %v259_v3  ;;  %v4575_v20 = vcombine.low %v256_v6, %v260_v7  ;;  %v319_v6 = vld [vmem:[#allocation2 + $0x790] sm:$0xff] }
  0xef   :  { %v323_v7 = vld [vmem:[#allocation2 + $0x7b0] sm:$0xff] }
  0xf0   :  { %1818 = vmatpush1.bf16.msra.mxu0 %v4501_v8  ;;  %1900 = vmatpush1.bf16.msra.mxu1 %v4503_v9  ;;  %v4568_v8 = vcombine.high %v248_v60, %v252_v63  ;;  %v4565_v9 = vcombine.low %v247_v57, %v251_v58  ;;  %v4613_v57 = vcombine.low %v295_v47, %v299_v48 }
  0xf1   :  { %1819 = vmatprep.subr.bf16.mxu0 %v4510_v10  ;;  %1901 = vmatprep.subr.bf16.mxu1 %v4512_v14  ;;  %v4567_v10 = vcombine.low %v248_v60, %v252_v63  ;;  %v267_v14 = vld [vmem:[#allocation2 + $0x5f0] sm:$0xff]  ;;  %v312_v63 = vld [vmem:[#allocation2 + $0x758] sm:$0xff] }
  0xf2   :  { %v4581_v27 = vcombine.low %v263_v13, %v267_v14  ;;  %v311_v60 = vld [vmem:[#allocation2 + $0x750] sm:$0xff] }
  0xf4   :  { %1820 = vmatpush1.bf16.msra.mxu0 %v4509_v17  ;;  %1902 = vmatpush1.bf16.msra.mxu1 %v4511_v21  ;;  %v268_v17 = vld [vmem:[#allocation2 + $0x5f8] sm:$0xff]  ;;  %v4582_v21 = vcombine.high %v263_v13, %v267_v14  ;;  %v327_v14 = vld [vmem:[#allocation2 + $0x7d0] sm:$0xff] }
  0xf5   :  { %1821 = vmatprep.subr.bf16.mxu0 %v4518_v22  ;;  %1903 = vmatprep.subr.bf16.mxu1 %v4520_v25  ;;  %v4584_v22 = vcombine.high %v264_v15, %v268_v17  ;;  %v272_v25 = vld [vmem:[#allocation2 + $0x618] sm:$0xff]  ;;  %v4583_v29 = vcombine.low %v264_v15, %v268_v17  ;;  %v331_v15 = vld [vmem:[#allocation2 + $0x7f0] sm:$0xff] }
  0xf6   :  { %v328_v17 = vld [vmem:[#allocation2 + $0x7d8] sm:$0xff] }
  0xf8   :  { %1822 = vmatpush1.bf16.msra.mxu0 %v4517_v26  ;;  %1904 = vmatpush1.bf16.msra.mxu1 %v4519_v30  ;;  %v276_v26 = vld [vmem:[#allocation2 + $0x638] sm:$0xff]  ;;  %v4590_v30 = vcombine.high %v271_v23, %v275_v24  ;;  %v4645_v24 = vcombine.low %v327_v14, %v331_v15 }
  0xf9   :  { %1832 = vmatprep.subr.bf16.mxu0 %v4526_v31  ;;  %1914 = vmatprep.subr.bf16.mxu1 %v4528_v34  ;;  %v4592_v31 = vcombine.high %v272_v25, %v276_v26  ;;  %v280_v34 = vld [vmem:[#allocation2 + $0x658] sm:$0xff]  ;;  %v4591_v37 = vcombine.low %v272_v25, %v276_v26  ;;  %v5034_v26 = vld [vmem:[#allocation4 + $0x4] ss:$16 sps:$4 sm:$0xff]  }
  0xfb   :  { %1824 = vmatmul.mubr.bf16.vlgmr.msra.gmra.mrb[4].mxu0 %v5621_v16  ;;  %1906 = vmatmul.mubr.bf16.vlgmr.msra.gmra.mrb[4].mxu1 %v5621_v16  ;;  %v4543_v16 = vcombine.low %v224_v39, %v228_v40  ;;  %v287_v39 = vld [vmem:[#allocation2 + $0x690] sm:$0xff] }
  0xfc   :  { %1833 = vmatpush1.bf16.msra.mxu0 %v4525_v35  ;;  %1915 = vmatpush1.bf16.msra.mxu1 %v4527_v19  ;;  %v284_v35 = vld [vmem:[#allocation2 + $0x678] sm:$0xff]  ;;  %v4598_v19 = vcombine.high %v279_v32, %v283_v33  ;;  %v291_v40 = vld [vmem:[#allocation2 + $0x6b0] sm:$0xff] }
  0xfd   :  { %1834 = vmatprep.subr.bf16.mxu0 %v4534_v38  ;;  %1916 = vmatprep.subr.bf16.mxu1 %v4536_v41  ;;  %v4600_v38 = vcombine.high %v280_v34, %v284_v35  ;;  %v288_v41 = vld [vmem:[#allocation2 + $0x698] sm:$0xff]  ;;  %v4599_v44 = vcombine.low %v280_v34, %v284_v35  ;;  %v5038_v33 = vld [vmem:[#allocation4 + $0x20] ss:$16 sps:$4 sm:$0xff]   ;;  %v5046_v35 = vld [vmem:[#allocation4 + $0x44] ss:$16 sps:$4 sm:$0xff]  }
  0xfe   :  { %1864 = vmatprep.mubr.bf16.mxu0 %v5627_v61  ;;  %1946 = vmatprep.mubr.bf16.mxu1 %v5627_v61  ;;  %v4558_v61 = vcombine.high %v239_v51, %v243_v52  ;;  %v4605_v51 = vcombine.low %v287_v39, %v291_v40  ;;  %v5043_v32 = vld [vmem:[#allocation4 + $0x2c] ss:$16 sps:$4 sm:$0xff]   ;;  %v5041_v34 = vld [vmem:[#allocation4 + $0x28] ss:$16 sps:$4 sm:$0xff]  }
 0x100   :  { %1835 = vmatpush1.bf16.msra.mxu0 %v4533_v42  ;;  %1917 = vmatpush1.bf16.msra.mxu1 %v4535_v45  ;;  %v292_v42 = vld [vmem:[#allocation2 + $0x6b8] sm:$0xff]  ;;  %v4606_v45 = vcombine.high %v287_v39, %v291_v40  ;;  %v5050_v40 = vld [vmem:[#allocation4 + $0x60] ss:$16 sps:$4 sm:$0xff]  }
 0x101   :  { %1836 = vmatprep.subr.bf16.mxu0 %v4542_v46  ;;  %1918 = vmatprep.subr.bf16.mxu1 %v4544_v49  ;;  %v4608_v46 = vcombine.high %v288_v41, %v292_v42  ;;  %v296_v49 = vld [vmem:[#allocation2 + $0x6d8] sm:$0xff]  ;;  %v4607_v52 = vcombine.low %v288_v41, %v292_v42  ;;  %v5058_v41 = vld [vmem:[#allocation4 + $0x84] ss:$16 sps:$4 sm:$0xff]  }
 0x102   :  { %v5055_v39 = vld [vmem:[#allocation4 + $0x6c] ss:$16 sps:$4 sm:$0xff]  }
 0x103   :  { %v5061_v42 = vld [vmem:[#allocation4 + $0x8c] ss:$16 sps:$4 sm:$0xff]  }
 0x104   :  { %1837 = vmatpush1.bf16.msra.mxu0 %v4541_v50  ;;  %1919 = vmatpush1.bf16.msra.mxu1 %v4543_v16  ;;  %v300_v50 = vld [vmem:[#allocation2 + $0x6f8] sm:$0xff]  ;;  %v4614_v16 = vcombine.high %v295_v47, %v299_v48  ;;  %v5062_v47 = vld [vmem:[#allocation4 + $0xa0] ss:$16 sps:$4 sm:$0xff]  }
 0x105   :  { %1838 = vmatprep.subr.bf16.mxu0 %v4550_v53  ;;  %1920 = vmatprep.subr.bf16.mxu1 %v4552_v55  ;;  %v4616_v53 = vcombine.high %v296_v49, %v300_v50  ;;  %v307_v55 = vld [vmem:[#allocation2 + $0x730] sm:$0xff]  ;;  %v4615_v58 = vcombine.low %v296_v49, %v300_v50  ;;  %v5065_v48 = vld [vmem:[#allocation4 + $0xa8] ss:$16 sps:$4 sm:$0xff]   ;;  %v5073_v50 = vld [vmem:[#allocation4 + $0xcc] ss:$16 sps:$4 sm:$0xff]  }
 0x106   :  { %v4621_v2 = vcombine.low %v303_v54, %v307_v55  ;;  %v5070_v49 = vld [vmem:[#allocation4 + $0xc4] ss:$16 sps:$4 sm:$0xff]  }
 0x108   :  { %1839 = vmatpush1.bf16.msra.mxu0 %v4549_v56  ;;  %1921 = vmatpush1.bf16.msra.mxu1 %v4551_v59  ;;  %v308_v56 = vld [vmem:[#allocation2 + $0x738] sm:$0xff]  ;;  %v4622_v59 = vcombine.high %v303_v54, %v307_v55  ;;  %v5074_v54 = vld [vmem:[#allocation4 + $0xe0] ss:$16 sps:$4 sm:$0xff]  }
 0x109   :  { %1840 = vmatprep.subr.bf16.mxu0 %v4558_v61  ;;  %1922 = vmatprep.subr.bf16.mxu1 %v4560_v62  ;;  %v4624_v61 = vcombine.high %v304_v0, %v308_v56  ;;  %v315_v62 = vld [vmem:[#allocation2 + $0x770] sm:$0xff]  ;;  %v4623_v3 = vcombine.low %v304_v0, %v308_v56  ;;  %v5077_v55 = vld [vmem:[#allocation4 + $0xe8] ss:$16 sps:$4 sm:$0xff]   ;;  %v5085_v56 = vld [vmem:[#allocation4 + $0x10c] ss:$16 sps:$4 sm:$0xff]  }
 0x10a   :  { %v5082_v0 = vld [vmem:[#allocation4 + $0x104] ss:$16 sps:$4 sm:$0xff]  }
 0x10c   :  { %1841 = vmatpush1.bf16.msra.mxu0 %v4557_v1  ;;  %1923 = vmatpush1.bf16.msra.mxu1 %v4559_v4  ;;  %v316_v1 = vld [vmem:[#allocation2 + $0x778] sm:$0xff]  ;;  %v4630_v4 = vcombine.high %v311_v60, %v315_v62 }
 0x10d   :  { %1842 = vmatprep.subr.bf16.mxu0 %v4566_v5  ;;  %1924 = vmatprep.subr.bf16.mxu1 %v4568_v8  ;;  %v4632_v5 = vcombine.high %v312_v63, %v316_v1  ;;  %v320_v8 = vld [vmem:[#allocation2 + $0x798] sm:$0xff] }
 0x110   :  { %1843 = vmatpush1.bf16.msra.mxu0 %v4565_v9  ;;  %1925 = vmatpush1.bf16.msra.mxu1 %v4567_v10  ;;  %v324_v9 = vld [vmem:[#allocation2 + $0x7b8] sm:$0xff]  ;;  %v4629_v10 = vcombine.low %v311_v60, %v315_v62  ;;  %v5086_v60 = vld [vmem:[#allocation4 + $0x120] ss:$16 sps:$4 sm:$0xff]  }
 0x111   :  { %1844 = vmatprep.subr.bf16.mxu0 %v4574_v11  ;;  %1926 = vmatprep.subr.bf16.mxu1 %v4576_v12  ;;  %v4631_v11 = vcombine.low %v312_v63, %v316_v1  ;;  %v4638_v12 = vcombine.high %v319_v6, %v323_v7  ;;  %v4640_v13 = vcombine.high %v320_v8, %v324_v9  ;;  %v5089_v62 = vld [vmem:[#allocation4 + $0x128] ss:$16 sps:$4 sm:$0xff]   ;;  %v5094_v63 = vld [vmem:[#allocation4 + $0x144] ss:$16 sps:$4 sm:$0xff]   ;;  %v5097_v1 = vld [vmem:[#allocation4 + $0x14c] ss:$16 sps:$4 sm:$0xff]  }
 0x114   :  { %1845 = vmatpush1.bf16.msra.mxu0 %v4573_v18  ;;  %1927 = vmatpush1.bf16.msra.mxu1 %v4575_v20  ;;  %v332_v18 = vld [vmem:[#allocation2 + $0x7f8] sm:$0xff]  ;;  %v4637_v20 = vcombine.low %v319_v6, %v323_v7  ;;  %v5098_v6 = vld [vmem:[#allocation4 + $0x160] ss:$16 sps:$4 sm:$0xff]  }
 0x115   :  { %1846 = vmatprep.subr.bf16.mxu0 %v4582_v21  ;;  %1928 = vmatprep.subr.bf16.mxu1 %v4584_v22  ;;  %v4639_v21 = vcombine.low %v320_v8, %v324_v9  ;;  %v4646_v22 = vcombine.high %v327_v14, %v331_v15  ;;  %v4648_v23 = vcombine.high %v328_v17, %v332_v18  ;;  %v5101_v7 = vld [vmem:[#allocation4 + $0x168] ss:$16 sps:$4 sm:$0xff]   ;;  %v5106_v8 = vld [vmem:[#allocation4 + $0x184] ss:$16 sps:$4 sm:$0xff]   ;;  %v5109_v9 = vld [vmem:[#allocation4 + $0x18c] ss:$16 sps:$4 sm:$0xff]  }
 0x116   :  { %v4647_v25 = vcombine.low %v328_v17, %v332_v18  ;;  %v5110_v14 = vld [vmem:[#allocation4 + $0x1a0] ss:$16 sps:$4 sm:$0xff]   ;;  %v5113_v15 = vld [vmem:[#allocation4 + $0x1a8] ss:$16 sps:$4 sm:$0xff]   ;;  %v5118_v17 = vld [vmem:[#allocation4 + $0x1c4] ss:$16 sps:$4 sm:$0xff]  }
 0x117   :  { %v5121_v18 = vld [vmem:[#allocation4 + $0x1cc] ss:$16 sps:$4 sm:$0xff]  }
 0x118   :  { %1847 = vmatpush1.bf16.msra.mxu0 %v4581_v27  ;;  %1929 = vmatpush1.bf16.msra.mxu1 %v4583_v29  ;;  %v5037_v27 = vld [vmem:[#allocation4 + $0xc] ss:$16 sps:$4 sm:$0xff]   ;;  %v5032_v29 = vld [vmem:[#allocation4] ss:$16 sps:$4 sm:$0xff]  }
 0x119   :  { %1848 = vmatprep.subr.bf16.mxu0 %v4590_v30  ;;  %1930 = vmatprep.subr.bf16.mxu1 %v4592_v31  ;;  %v5035_v30 = vld [vmem:[#allocation4 + $0x8] ss:$16 sps:$4 sm:$0xff]   ;;  %v5040_v31 = vld [vmem:[#allocation4 + $0x24] ss:$16 sps:$4 sm:$0xff]  }
 0x11c   :  { %1849 = vmatpush1.bf16.msra.mxu0 %v4589_v36  ;;  %1931 = vmatpush1.bf16.msra.mxu1 %v4591_v37  ;;  %v5049_v36 = vld [vmem:[#allocation4 + $0x4c] ss:$16 sps:$4 sm:$0xff]   ;;  %v5044_v37 = vld [vmem:[#allocation4 + $0x40] ss:$16 sps:$4 sm:$0xff]  }
 0x11d   :  { %1850 = vmatprep.subr.bf16.mxu0 %v4598_v19  ;;  %1932 = vmatprep.subr.bf16.mxu1 %v4600_v38  ;;  %v5047_v19 = vld [vmem:[#allocation4 + $0x48] ss:$16 sps:$4 sm:$0xff]   ;;  %v5052_v38 = vld [vmem:[#allocation4 + $0x64] ss:$16 sps:$4 sm:$0xff]  }
 0x120   :  { %1851 = vmatpush1.bf16.msra.mxu0 %v4597_v43  ;;  %1933 = vmatpush1.bf16.msra.mxu1 %v4599_v44  ;;  %v5056_v43 = vld [vmem:[#allocation4 + $0x80] ss:$16 sps:$4 sm:$0xff]   ;;  %v5059_v44 = vld [vmem:[#allocation4 + $0x88] ss:$16 sps:$4 sm:$0xff]  }
 0x121   :  { %1852 = vmatprep.subr.bf16.mxu0 %v4606_v45  ;;  %1934 = vmatprep.subr.bf16.mxu1 %v4608_v46  ;;  %v5064_v45 = vld [vmem:[#allocation4 + $0xa4] ss:$16 sps:$4 sm:$0xff]   ;;  %v5067_v46 = vld [vmem:[#allocation4 + $0xac] ss:$16 sps:$4 sm:$0xff]  }
 0x124   :  { %1853 = vmatpush1.bf16.msra.mxu0 %v4605_v51  ;;  %1935 = vmatpush1.bf16.msra.mxu1 %v4607_v52  ;;  %v5068_v51 = vld [vmem:[#allocation4 + $0xc0] ss:$16 sps:$4 sm:$0xff]   ;;  %v5071_v52 = vld [vmem:[#allocation4 + $0xc8] ss:$16 sps:$4 sm:$0xff]  }
 0x125   :  { %1854 = vmatprep.subr.bf16.mxu0 %v4614_v16  ;;  %1936 = vmatprep.subr.bf16.mxu1 %v4616_v53  ;;  %v5076_v16 = vld [vmem:[#allocation4 + $0xe4] ss:$16 sps:$4 sm:$0xff]   ;;  %v5079_v53 = vld [vmem:[#allocation4 + $0xec] ss:$16 sps:$4 sm:$0xff]  }
 0x128   :  { %1855 = vmatpush1.bf16.msra.mxu0 %v4613_v57  ;;  %1937 = vmatpush1.bf16.msra.mxu1 %v4615_v58  ;;  %v5080_v57 = vld [vmem:[#allocation4 + $0x100] ss:$16 sps:$4 sm:$0xff]   ;;  %v5083_v58 = vld [vmem:[#allocation4 + $0x108] ss:$16 sps:$4 sm:$0xff]  }
 0x129   :  { %1856 = vmatprep.subr.bf16.mxu0 %v4622_v59  ;;  %1938 = vmatprep.subr.bf16.mxu1 %v4624_v61  ;;  %v5088_v59 = vld [vmem:[#allocation4 + $0x124] ss:$16 sps:$4 sm:$0xff]   ;;  %v5091_v61 = vld [vmem:[#allocation4 + $0x12c] ss:$16 sps:$4 sm:$0xff]  }
 0x12c   :  { %1857 = vmatpush1.bf16.msra.mxu0 %v4621_v2  ;;  %1939 = vmatpush1.bf16.msra.mxu1 %v4623_v3  ;;  %v5092_v2 = vld [vmem:[#allocation4 + $0x140] ss:$16 sps:$4 sm:$0xff]   ;;  %v5095_v3 = vld [vmem:[#allocation4 + $0x148] ss:$16 sps:$4 sm:$0xff]  }
 0x12d   :  { %1858 = vmatprep.subr.bf16.mxu0 %v4630_v4  ;;  %1940 = vmatprep.subr.bf16.mxu1 %v4632_v5  ;;  %v5100_v4 = vld [vmem:[#allocation4 + $0x164] ss:$16 sps:$4 sm:$0xff]   ;;  %v5103_v5 = vld [vmem:[#allocation4 + $0x16c] ss:$16 sps:$4 sm:$0xff]  }
 0x130   :  { %1859 = vmatpush1.bf16.msra.mxu0 %v4629_v10  ;;  %1941 = vmatpush1.bf16.msra.mxu1 %v4631_v11  ;;  %v5104_v10 = vld [vmem:[#allocation4 + $0x180] ss:$16 sps:$4 sm:$0xff]   ;;  %v5107_v11 = vld [vmem:[#allocation4 + $0x188] ss:$16 sps:$4 sm:$0xff]  }
 0x131   :  { %1860 = vmatprep.subr.bf16.mxu0 %v4638_v12  ;;  %1942 = vmatprep.subr.bf16.mxu1 %v4640_v13  ;;  %v5112_v12 = vld [vmem:[#allocation4 + $0x1a4] ss:$16 sps:$4 sm:$0xff]   ;;  %v5115_v13 = vld [vmem:[#allocation4 + $0x1ac] ss:$16 sps:$4 sm:$0xff]  }
 0x134   :  { %1861 = vmatpush1.bf16.msra.mxu0 %v4637_v20  ;;  %1943 = vmatpush1.bf16.msra.mxu1 %v4639_v21  ;;  %v5528_v20 = vmov 1966171168  }
 0x135   :  { %1862 = vmatprep.subr.bf16.mxu0 %v4646_v22  ;;  %1944 = vmatprep.subr.bf16.mxu1 %v4648_v23  ;;  %v1967_v21 = vunpack.c.l.s4 %v5528_v20  ;;  %v1969_v22 = vlaneseq  ;;  %v5116_v23 = vld [vmem:[#allocation4 + $0x1c0] ss:$16 sps:$4 sm:$0xff]   ;;  %v5155_v20 = vld [vmem:[#allocation4 + $0x288] ss:$16 sps:$4 sm:$0xff]  }
 0x138   :  { %1863 = vmatpush1.bf16.msra.mxu0 %v4645_v24  ;;  %1945 = vmatpush1.bf16.msra.mxu1 %v4647_v25  ;;  %v5119_v24 = vld [vmem:[#allocation4 + $0x1c8] ss:$16 sps:$4 sm:$0xff]   ;;  %v5124_v25 = vld [vmem:[#allocation4 + $0x1e4] ss:$16 sps:$4 sm:$0xff]  }
 0x139   :  { %3638 = vmatprep.subr.bf16.mxu0 %v5034_v26  ;;  %3802 = vmatprep.subr.bf16.mxu1 %v5037_v27  ;;  %v5127_v26 = vld [vmem:[#allocation4 + $0x1ec] ss:$16 sps:$4 sm:$0xff]   ;;  %v1968_v27 = vunpack.c.0.s8 %v1967_v21  ;;  %v5160_v21 = vld [vmem:[#allocation4 + $0x2a4] ss:$16 sps:$4 sm:$0xff]  }
 0x13b   :  { %1865 = vmatmul.mubr.bf16.vlgmr.msra.gmra.mrb[4].mxu0 %v5635_v28  ;;  %1947 = vmatmul.mubr.bf16.vlgmr.msra.gmra.mrb[4].mxu1 %v5635_v28  ;;  %v5053_v28 = vld [vmem:[#allocation4 + $0x68] ss:$16 sps:$4 sm:$0xff]  }
 0x13c   :  { %3639 = vmatpush1.bf16.msra.mxu0 %v5032_v29  ;;  %3803 = vmatpush1.bf16.msra.mxu1 %v5035_v30  ;;  %v1970_v29 = vshrl.u32 %v1969_v22, 7  ;;  %v5122_v30 = vld [vmem:[#allocation4 + $0x1e0] ss:$16 sps:$4 sm:$0xff]   ;;  %v5163_v22 = vld [vmem:[#allocation4 + $0x2ac] ss:$16 sps:$4 sm:$0xff]  }
 0x13d   :  { %3640 = vmatprep.subr.bf16.mxu0 %v5040_v31  ;;  %3804 = vmatprep.subr.bf16.mxu1 %v5043_v32  ;;  %v5125_v31 = vld [vmem:[#allocation4 + $0x1e8] ss:$16 sps:$4 sm:$0xff]   ;;  %v5130_v32 = vld [vmem:[#allocation4 + $0x204] ss:$16 sps:$4 sm:$0xff]  }
 0x140   :  { %3641 = vmatpush1.bf16.msra.mxu0 %v5038_v33  ;;  %3805 = vmatpush1.bf16.msra.mxu1 %v5041_v34  ;;  %v5133_v33 = vld [vmem:[#allocation4 + $0x20c] ss:$16 sps:$4 sm:$0xff]   ;;  %v5647_v34 = vsub.s32 %v1968_v27, %v1970_v29  ;;  %v5164_v27 = vld [vmem:[#allocation4 + $0x2c0] ss:$16 sps:$4 sm:$0xff]  }
 0x141   :  { %3642 = vmatprep.subr.bf16.mxu0 %v5046_v35  ;;  %3806 = vmatprep.subr.bf16.mxu1 %v5049_v36  ;;  %v5652_v35 = vld [vmem:[%s5711_s2] sm:$0xff] }
 0x142   :  { %v1972_v36 = vrot.slane %v5652_v35, %v5647_v34 }
 0x144   :  { %3643 = vmatpush1.bf16.msra.mxu0 %v5044_v37  ;;  %3807 = vmatpush1.bf16.msra.mxu1 %v5047_v19  ;;  %v1980_v37 = vcombine.high %v1972_v36, %v1972_v36 }
 0x145   :  { %3644 = vmatprep.subr.bf16.mxu0 %v5052_v38  ;;  %3808 = vmatprep.subr.bf16.mxu1 %v5055_v39  ;;  %v5658_v38 = vrot.slane %v1972_v36, %v5647_v34  ;;  %v5178_v36 = vld [vmem:[#allocation4 + $0x304] ss:$16 sps:$4 sm:$0xff]  }
 0x146   :  { %v2002_v19 = vrot.slane %v1980_v37, %v5647_v34  ;;  %v5181_v37 = vld [vmem:[#allocation4 + $0x30c] ss:$16 sps:$4 sm:$0xff]  }
 0x148   :  { %3645 = vmatpush1.bf16.msra.mxu0 %v5050_v40  ;;  %3809 = vmatpush1.bf16.msra.mxu1 %v5053_v28  ;;  %v2012_v39 = vcombine.high %v2002_v19, %v2002_v19  ;;  %v2015_v40 = vpack.i.b16 %v5658_v38, %v5658_v38  ;;  %v5662_v28 = vsub.s32 0, %v1970_v29  ;;  %v5167_v29 = vld [vmem:[#allocation4 + $0x2c8] ss:$16 sps:$4 sm:$0xff]  }
 0x149   :  { %3646 = vmatprep.subr.bf16.mxu0 %v5058_v41  ;;  %3810 = vmatprep.subr.bf16.mxu1 %v5061_v42  ;;  %v2022_v41 = vpack.i.b16 %v2002_v19, %v2002_v19  ;;  %v5176_v19 = vld [vmem:[#allocation4 + $0x300] ss:$16 sps:$4 sm:$0xff]  }
 0x14a   :  { %v2036_v42 = vpack.i.b16 %v2012_v39, %v2012_v39  ;;  %v5179_v39 = vld [vmem:[#allocation4 + $0x308] ss:$16 sps:$4 sm:$0xff]  }
 0x14c   :  { %3647 = vmatpush1.bf16.msra.mxu0 %v5056_v43  ;;  %3811 = vmatpush1.bf16.msra.mxu1 %v5059_v44  ;;  %v2020_v43 = vrot.slane %v2015_v40, %v5662_v28  ;;  %v5184_v40 = vld [vmem:[#allocation4 + $0x324] ss:$16 sps:$4 sm:$0xff]  }
 0x14d   :  { %3648 = vmatprep.subr.bf16.mxu0 %v5064_v45  ;;  %3812 = vmatprep.subr.bf16.mxu1 %v5067_v46  ;;  %v2027_v45 = vrot.slane %v2022_v41, %v5662_v28  ;;  %v5187_v41 = vld [vmem:[#allocation4 + $0x32c] ss:$16 sps:$4 sm:$0xff]  }
 0x150   :  { %3649 = vmatpush1.bf16.msra.mxu0 %v5062_v47  ;;  %3813 = vmatpush1.bf16.msra.mxu1 %v5065_v48 }
 0x151   :  { %3650 = vmatprep.subr.bf16.mxu0 %v5070_v49  ;;  %3814 = vmatprep.subr.bf16.mxu1 %v5073_v50  ;;  %v2041_v49 = vrot.slane %v2036_v42, %v5662_v28  ;;  %v5182_v42 = vld [vmem:[#allocation4 + $0x320] ss:$16 sps:$4 sm:$0xff]  }
 0x154   :  { %3651 = vmatpush1.bf16.msra.mxu0 %v5068_v51  ;;  %3815 = vmatpush1.bf16.msra.mxu1 %v5071_v52 }
 0x155   :  { %3652 = vmatprep.subr.bf16.mxu0 %v5076_v16  ;;  %3816 = vmatprep.subr.bf16.mxu1 %v5079_v53 }
 0x158   :  { %3653 = vmatpush1.bf16.msra.mxu0 %v5074_v54  ;;  %3817 = vmatpush1.bf16.msra.mxu1 %v5077_v55 }
 0x159   :  { %3654 = vmatprep.subr.bf16.mxu0 %v5082_v0  ;;  %3818 = vmatprep.subr.bf16.mxu1 %v5085_v56 }
 0x15c   :  { %3655 = vmatpush1.bf16.msra.mxu0 %v5080_v57  ;;  %3819 = vmatpush1.bf16.msra.mxu1 %v5083_v58 }
 0x15d   :  { %3656 = vmatprep.subr.bf16.mxu0 %v5088_v59  ;;  %3820 = vmatprep.subr.bf16.mxu1 %v5091_v61  ;;  %v5128_v61 = vld [vmem:[#allocation4 + $0x200] ss:$16 sps:$4 sm:$0xff]  }
 0x160   :  { %3657 = vmatpush1.bf16.msra.mxu0 %v5086_v60  ;;  %3821 = vmatpush1.bf16.msra.mxu1 %v5089_v62  ;;  %v5131_v60 = vld [vmem:[#allocation4 + $0x208] ss:$16 sps:$4 sm:$0xff]  }
 0x161   :  { %3658 = vmatprep.subr.bf16.mxu0 %v5094_v63  ;;  %3822 = vmatprep.subr.bf16.mxu1 %v5097_v1 }
 0x164   :  { %3659 = vmatpush1.bf16.msra.mxu0 %v5092_v2  ;;  %3823 = vmatpush1.bf16.msra.mxu1 %v5095_v3  ;;  %v5136_v2 = vld [vmem:[#allocation4 + $0x224] ss:$16 sps:$4 sm:$0xff]   ;;  %v5139_v3 = vld [vmem:[#allocation4 + $0x22c] ss:$16 sps:$4 sm:$0xff]  }
 0x165   :  { %3660 = vmatprep.subr.bf16.mxu0 %v5100_v4  ;;  %3824 = vmatprep.subr.bf16.mxu1 %v5103_v5  ;;  %v5134_v5 = vld [vmem:[#allocation4 + $0x220] ss:$16 sps:$4 sm:$0xff]  }
 0x168   :  { %3661 = vmatpush1.bf16.msra.mxu0 %v5098_v6  ;;  %3825 = vmatpush1.bf16.msra.mxu1 %v5101_v7  ;;  %v5137_v6 = vld [vmem:[#allocation4 + $0x228] ss:$16 sps:$4 sm:$0xff]   ;;  %v5142_v7 = vld [vmem:[#allocation4 + $0x244] ss:$16 sps:$4 sm:$0xff]  }
 0x169   :  { %3662 = vmatprep.subr.bf16.mxu0 %v5106_v8  ;;  %3826 = vmatprep.subr.bf16.mxu1 %v5109_v9  ;;  %v5145_v8 = vld [vmem:[#allocation4 + $0x24c] ss:$16 sps:$4 sm:$0xff]   ;;  %v5140_v9 = vld [vmem:[#allocation4 + $0x240] ss:$16 sps:$4 sm:$0xff]  }
 0x16c   :  { %3663 = vmatpush1.bf16.msra.mxu0 %v5104_v10  ;;  %3827 = vmatpush1.bf16.msra.mxu1 %v5107_v11  ;;  %v5143_v10 = vld [vmem:[#allocation4 + $0x248] ss:$16 sps:$4 sm:$0xff]   ;;  %v5148_v11 = vld [vmem:[#allocation4 + $0x264] ss:$16 sps:$4 sm:$0xff]  }
 0x16d   :  { %3664 = vmatprep.subr.bf16.mxu0 %v5112_v12  ;;  %3828 = vmatprep.subr.bf16.mxu1 %v5115_v13  ;;  %v5151_v12 = vld [vmem:[#allocation4 + $0x26c] ss:$16 sps:$4 sm:$0xff]   ;;  %v5146_v13 = vld [vmem:[#allocation4 + $0x260] ss:$16 sps:$4 sm:$0xff]  }
 0x170   :  { %3665 = vmatpush1.bf16.msra.mxu0 %v5110_v14  ;;  %3829 = vmatpush1.bf16.msra.mxu1 %v5113_v15  ;;  %v5149_v14 = vld [vmem:[#allocation4 + $0x268] ss:$16 sps:$4 sm:$0xff]   ;;  %v5154_v15 = vld [vmem:[#allocation4 + $0x284] ss:$16 sps:$4 sm:$0xff]  }
 0x171   :  { %3666 = vmatprep.subr.bf16.mxu0 %v5118_v17  ;;  %3830 = vmatprep.subr.bf16.mxu1 %v5121_v18  ;;  %v5157_v17 = vld [vmem:[#allocation4 + $0x28c] ss:$16 sps:$4 sm:$0xff]   ;;  %v5152_v18 = vld [vmem:[#allocation4 + $0x280] ss:$16 sps:$4 sm:$0xff]  }
 0x174   :  { %3667 = vmatpush1.bf16.msra.mxu0 %v5116_v23  ;;  %3831 = vmatpush1.bf16.msra.mxu1 %v5119_v24  ;;  %v5158_v23 = vld [vmem:[#allocation4 + $0x2a0] ss:$16 sps:$4 sm:$0xff]   ;;  %v5161_v24 = vld [vmem:[#allocation4 + $0x2a8] ss:$16 sps:$4 sm:$0xff]  }
 0x175   :  { %3668 = vmatprep.subr.bf16.mxu0 %v5124_v25  ;;  %3832 = vmatprep.subr.bf16.mxu1 %v5127_v26  ;;  %v5166_v25 = vld [vmem:[#allocation4 + $0x2c4] ss:$16 sps:$4 sm:$0xff]   ;;  %v5169_v26 = vld [vmem:[#allocation4 + $0x2cc] ss:$16 sps:$4 sm:$0xff]  }
 0x178   :  { %3669 = vmatpush1.bf16.msra.mxu0 %v5122_v30  ;;  %3833 = vmatpush1.bf16.msra.mxu1 %v5125_v31  ;;  %v5172_v30 = vld [vmem:[#allocation4 + $0x2e4] ss:$16 sps:$4 sm:$0xff]   ;;  %v5175_v31 = vld [vmem:[#allocation4 + $0x2ec] ss:$16 sps:$4 sm:$0xff]  }
 0x179   :  { %3679 = vmatprep.subr.bf16.mxu0 %v5130_v32  ;;  %3843 = vmatprep.subr.bf16.mxu1 %v5133_v33  ;;  %v5170_v32 = vld [vmem:[#allocation4 + $0x2e0] ss:$16 sps:$4 sm:$0xff]   ;;  %v5173_v33 = vld [vmem:[#allocation4 + $0x2e8] ss:$16 sps:$4 sm:$0xff]  }
 0x18e   :  { %v1702_v44 = vpop.f32.mrb[0].mxu0  ;;  %v5666_v47 = vpop.f32.mrb[0].mxu1 }
 0x18f   :  { %v1955_v46 = vpack.c.bf16 %v1702_v44, %v1702_v44  ;;  %v1704_v48 = vpop.f32.mrb[1].mxu0  ;;  %v1786_v51 = vpop.f32.mrb[1].mxu1  ;;  %v5190_v44 = vld [vmem:[#allocation4 + $0x344] ss:$16 sps:$4 sm:$0xff]  }
 0x190   :  { %v1956_v50 = vpack.c.bf16 %v1704_v48, %v1704_v48  ;;  %v1706_v52 = vpop.f32.mrb[2].mxu0  ;;  %v1958_v53 = vpack.c.bf16 %v1786_v51, %v1786_v51  ;;  %v1788_v54 = vpop.f32.mrb[2].mxu1  ;;  %v5191_v48 = vld [vmem:[#allocation4 + $0x348] ss:$16 sps:$4 sm:$0xff]   ;;  %v5194_v51 = vld [vmem:[#allocation4 + $0x360] ss:$16 sps:$4 sm:$0xff]  }
 0x191   :  { %v2070_v16 = vadd.bf16 %v2020_v43, %v1955_v46  ;;  %v1707_v55 = vpop.f32.mrb[3].mxu0  ;;  %v1789_v56 = vpop.f32.mrb[3].mxu1  ;;  %v5185_v43 = vld [vmem:[#allocation4 + $0x328] ss:$16 sps:$4 sm:$0xff]   ;;  %v5188_v46 = vld [vmem:[#allocation4 + $0x340] ss:$16 sps:$4 sm:$0xff]   ;;  %v2010_v54 = vcombine.high %v5658_v38, %v5658_v38  ;;  %v1957_v38 = vpack.c.bf16 %v5666_v47, %v5666_v47 }
 0x192   :  { %v2071_v0 = vadd.bf16 %v2027_v45, %v1956_v50  ;;  %v2073_v58 = vadd.bf16 %v2041_v49, %v1958_v53  ;;  %v5193_v45 = vld [vmem:[#allocation4 + $0x34c] ss:$16 sps:$4 sm:$0xff]   ;;  %v5196_v49 = vld [vmem:[#allocation4 + $0x364] ss:$16 sps:$4 sm:$0xff]   ;;  %v5197_v52 = vld [vmem:[#allocation4 + $0x368] ss:$16 sps:$4 sm:$0xff]  }
 0x193   :  { %v2086_v57 = vmul.bf16 1009007652, %v2070_v16  ;;  %vm2078_vm3 = vcmp.ge.bf16.partialorder %v2070_v16, 0  ;;  %v5199_v50 = vld [vmem:[#allocation4 + $0x36c] ss:$16 sps:$4 sm:$0xff]  }
 0x194   :  { %vm2079_vm2 = vcmp.ge.bf16.partialorder %v2071_v0, 0  ;;  %v2087_v59 = vmul.bf16 1009007652, %v2071_v0  ;;  %v2089_v62 = vmul.bf16 1009007652, %v2073_v58  ;;  %vm2081_vm4 = vcmp.ge.bf16.partialorder %v2073_v58, 0 }
 0x195   :  { %v2094_v1 = vsel %vm2078_vm3, %v2070_v16, %v2086_v57  ;;  %v5202_v16 = vld [vmem:[#allocation4 + $0x384] ss:$16 sps:$4 sm:$0xff]   ;;  %v5205_v53 = vld [vmem:[#allocation4 + $0x38c] ss:$16 sps:$4 sm:$0xff]   ;;  %v5200_v55 = vld [vmem:[#allocation4 + $0x380] ss:$16 sps:$4 sm:$0xff]  }
 0x196   :  { %v2095_v63 = vsel %vm2079_vm2, %v2071_v0, %v2087_v59  ;;  %v2097_v4 = vsel %vm2081_vm4, %v2073_v58, %v2089_v62  ;;  %v5203_v0 = vld [vmem:[#allocation4 + $0x388] ss:$16 sps:$4 sm:$0xff]   ;;  %v5208_v56 = vld [vmem:[#allocation4 + $0x3a4] ss:$16 sps:$4 sm:$0xff]   ;;  %v5211_v57 = vld [vmem:[#allocation4 + $0x3ac] ss:$16 sps:$4 sm:$0xff]   ;;  %v2029_v58 = vpack.i.b16 %v2010_v54, %v2010_v54 }
 0x197   :  { %3670 = vmatprep.mubr.bf16.mxu0 %v2095_v63  ;;  %3834 = vmatprep.mubr.bf16.mxu1 %v2095_v63  ;;  %v5206_v59 = vld [vmem:[#allocation4 + $0x3a0] ss:$16 sps:$4 sm:$0xff]   ;;  %v5217_v62 = vld [vmem:[#allocation4 + $0x3cc] ss:$16 sps:$4 sm:$0xff]   ;;  %v5281_v54 = vld [vmem:[#allocation4 + $0x528] ss:$16 sps:$4 sm:$0xff]  }
 0x198   :  { %3671 = vmatmul.mubr.bf16.vlgmr.msra.gmra.mrb[8].mxu0 %v2094_v1  ;;  %3835 = vmatmul.mubr.bf16.vlgmr.msra.gmra.mrb[8].mxu1 %v2094_v1  ;;  %v2034_v63 = vrot.slane %v2029_v58, %v5662_v28  ;;  %v5212_v1 = vld [vmem:[#allocation4 + $0x3c0] ss:$16 sps:$4 sm:$0xff]   ;;  %v5287_v58 = vld [vmem:[#allocation4 + $0x548] ss:$16 sps:$4 sm:$0xff]  }
 0x199   :  { %3680 = vmatpush1.bf16.msra.mxu0 %v5128_v61  ;;  %3844 = vmatpush1.bf16.msra.mxu1 %v5131_v60  ;;  %v5209_v61 = vld [vmem:[#allocation4 + $0x3a8] ss:$16 sps:$4 sm:$0xff]   ;;  %v5214_v60 = vld [vmem:[#allocation4 + $0x3c4] ss:$16 sps:$4 sm:$0xff]  }
 0x19a   :  { %3711 = vmatprep.mubr.bf16.mxu0 %v2097_v4  ;;  %3875 = vmatprep.mubr.bf16.mxu1 %v2097_v4  ;;  %v5223_v4 = vld [vmem:[#allocation4 + $0x3ec] ss:$16 sps:$4 sm:$0xff]  }
 0x19b   :  { %3681 = vmatprep.subr.bf16.mxu0 %v5136_v2  ;;  %3845 = vmatprep.subr.bf16.mxu1 %v5139_v3  ;;  %v5215_v2 = vld [vmem:[#allocation4 + $0x3c8] ss:$16 sps:$4 sm:$0xff]   ;;  %v5220_v3 = vld [vmem:[#allocation4 + $0x3e4] ss:$16 sps:$4 sm:$0xff]  }
 0x19d   :  { %3682 = vmatpush1.bf16.msra.mxu0 %v5134_v5  ;;  %3846 = vmatpush1.bf16.msra.mxu1 %v5137_v6  ;;  %v2072_v5 = vadd.bf16 %v2034_v63, %v1957_v38  ;;  %v5218_v6 = vld [vmem:[#allocation4 + $0x3e0] ss:$16 sps:$4 sm:$0xff]   ;;  %v5298_v38 = vld [vmem:[#allocation4 + $0x584] ss:$16 sps:$4 sm:$0xff]   ;;  %v5301_v63 = vld [vmem:[#allocation4 + $0x58c] ss:$16 sps:$4 sm:$0xff]  }
 0x19e   :  { %3683 = vmatprep.subr.bf16.mxu0 %v5142_v7  ;;  %3847 = vmatprep.subr.bf16.mxu1 %v5145_v8  ;;  %v5221_v7 = vld [vmem:[#allocation4 + $0x3e8] ss:$16 sps:$4 sm:$0xff]   ;;  %v5226_v8 = vld [vmem:[#allocation4 + $0x404] ss:$16 sps:$4 sm:$0xff]  }
 0x19f   :  { %v2088_v47 = vmul.bf16 1009007652, %v2072_v5  ;;  %vm2080_vm5 = vcmp.ge.bf16.partialorder %v2072_v5, 0 }
 0x1a1   :  { %3684 = vmatpush1.bf16.msra.mxu0 %v5140_v9  ;;  %3848 = vmatpush1.bf16.msra.mxu1 %v5143_v10  ;;  %v5229_v9 = vld [vmem:[#allocation4 + $0x40c] ss:$16 sps:$4 sm:$0xff]   ;;  %v5224_v10 = vld [vmem:[#allocation4 + $0x400] ss:$16 sps:$4 sm:$0xff]  }
 0x1a2   :  { %3685 = vmatprep.subr.bf16.mxu0 %v5148_v11  ;;  %3849 = vmatprep.subr.bf16.mxu1 %v5151_v12  ;;  %v5227_v11 = vld [vmem:[#allocation4 + $0x408] ss:$16 sps:$4 sm:$0xff]   ;;  %v5232_v12 = vld [vmem:[#allocation4 + $0x424] ss:$16 sps:$4 sm:$0xff]  }
 0x1a5   :  { %3686 = vmatpush1.bf16.msra.mxu0 %v5146_v13  ;;  %3850 = vmatpush1.bf16.msra.mxu1 %v5149_v14  ;;  %v5235_v13 = vld [vmem:[#allocation4 + $0x42c] ss:$16 sps:$4 sm:$0xff]   ;;  %v2096_v14 = vsel %vm2080_vm5, %v2072_v5, %v2088_v47 }
 0x1a6   :  { %3687 = vmatprep.subr.bf16.mxu0 %v5154_v15  ;;  %3851 = vmatprep.subr.bf16.mxu1 %v5157_v17  ;;  %v5230_v15 = vld [vmem:[#allocation4 + $0x420] ss:$16 sps:$4 sm:$0xff]   ;;  %v5233_v17 = vld [vmem:[#allocation4 + $0x428] ss:$16 sps:$4 sm:$0xff]   ;;  %v5307_v5 = vld [vmem:[#allocation4 + $0x5ac] ss:$16 sps:$4 sm:$0xff]  }
 0x1a9   :  { %3688 = vmatpush1.bf16.msra.mxu0 %v5152_v18  ;;  %3852 = vmatpush1.bf16.msra.mxu1 %v5155_v20  ;;  %v5238_v18 = vld [vmem:[#allocation4 + $0x444] ss:$16 sps:$4 sm:$0xff]   ;;  %v5241_v20 = vld [vmem:[#allocation4 + $0x44c] ss:$16 sps:$4 sm:$0xff]  }
 0x1aa   :  { %3689 = vmatprep.subr.bf16.mxu0 %v5160_v21  ;;  %3853 = vmatprep.subr.bf16.mxu1 %v5163_v22  ;;  %v5236_v21 = vld [vmem:[#allocation4 + $0x440] ss:$16 sps:$4 sm:$0xff]   ;;  %v5239_v22 = vld [vmem:[#allocation4 + $0x448] ss:$16 sps:$4 sm:$0xff]  }
 0x1ad   :  { %3690 = vmatpush1.bf16.msra.mxu0 %v5158_v23  ;;  %3854 = vmatpush1.bf16.msra.mxu1 %v5161_v24  ;;  %v5244_v23 = vld [vmem:[#allocation4 + $0x464] ss:$16 sps:$4 sm:$0xff]   ;;  %v5247_v24 = vld [vmem:[#allocation4 + $0x46c] ss:$16 sps:$4 sm:$0xff]  }
 0x1ae   :  { %3691 = vmatprep.subr.bf16.mxu0 %v5166_v25  ;;  %3855 = vmatprep.subr.bf16.mxu1 %v5169_v26  ;;  %v5242_v25 = vld [vmem:[#allocation4 + $0x460] ss:$16 sps:$4 sm:$0xff]   ;;  %v5245_v26 = vld [vmem:[#allocation4 + $0x468] ss:$16 sps:$4 sm:$0xff]  }
 0x1b1   :  { %3692 = vmatpush1.bf16.msra.mxu0 %v5164_v27  ;;  %3856 = vmatpush1.bf16.msra.mxu1 %v5167_v29  ;;  %v5250_v27 = vld [vmem:[#allocation4 + $0x484] ss:$16 sps:$4 sm:$0xff]   ;;  %v5253_v29 = vld [vmem:[#allocation4 + $0x48c] ss:$16 sps:$4 sm:$0xff]  }
 0x1b2   :  { %3693 = vmatprep.subr.bf16.mxu0 %v5172_v30  ;;  %3857 = vmatprep.subr.bf16.mxu1 %v5175_v31  ;;  %v5248_v30 = vld [vmem:[#allocation4 + $0x480] ss:$16 sps:$4 sm:$0xff]   ;;  %v5251_v31 = vld [vmem:[#allocation4 + $0x488] ss:$16 sps:$4 sm:$0xff]  }
 0x1b5   :  { %3694 = vmatpush1.bf16.msra.mxu0 %v5170_v32  ;;  %3858 = vmatpush1.bf16.msra.mxu1 %v5173_v33  ;;  %v5256_v32 = vld [vmem:[#allocation4 + $0x4a4] ss:$16 sps:$4 sm:$0xff]   ;;  %v5259_v33 = vld [vmem:[#allocation4 + $0x4ac] ss:$16 sps:$4 sm:$0xff]  }
 0x1b6   :  { %3695 = vmatprep.subr.bf16.mxu0 %v5178_v36  ;;  %3859 = vmatprep.subr.bf16.mxu1 %v5181_v37  ;;  %v5254_v36 = vld [vmem:[#allocation4 + $0x4a0] ss:$16 sps:$4 sm:$0xff]   ;;  %v5257_v37 = vld [vmem:[#allocation4 + $0x4a8] ss:$16 sps:$4 sm:$0xff]  }
 0x1b9   :  { %3696 = vmatpush1.bf16.msra.mxu0 %v5176_v19  ;;  %3860 = vmatpush1.bf16.msra.mxu1 %v5179_v39  ;;  %v5262_v19 = vld [vmem:[#allocation4 + $0x4c4] ss:$16 sps:$4 sm:$0xff]   ;;  %v5265_v39 = vld [vmem:[#allocation4 + $0x4cc] ss:$16 sps:$4 sm:$0xff]  }
 0x1ba   :  { %3697 = vmatprep.subr.bf16.mxu0 %v5184_v40  ;;  %3861 = vmatprep.subr.bf16.mxu1 %v5187_v41  ;;  %v5260_v40 = vld [vmem:[#allocation4 + $0x4c0] ss:$16 sps:$4 sm:$0xff]   ;;  %v5263_v41 = vld [vmem:[#allocation4 + $0x4c8] ss:$16 sps:$4 sm:$0xff]  }
 0x1bd   :  { %3698 = vmatpush1.bf16.msra.mxu0 %v5182_v42  ;;  %3862 = vmatpush1.bf16.msra.mxu1 %v5185_v43  ;;  %v5268_v42 = vld [vmem:[#allocation4 + $0x4e4] ss:$16 sps:$4 sm:$0xff]   ;;  %v5271_v43 = vld [vmem:[#allocation4 + $0x4ec] ss:$16 sps:$4 sm:$0xff]  }
 0x1be   :  { %3699 = vmatprep.subr.bf16.mxu0 %v5190_v44  ;;  %3863 = vmatprep.subr.bf16.mxu1 %v5193_v45  ;;  %v5266_v44 = vld [vmem:[#allocation4 + $0x4e0] ss:$16 sps:$4 sm:$0xff]   ;;  %v5269_v45 = vld [vmem:[#allocation4 + $0x4e8] ss:$16 sps:$4 sm:$0xff]  }
 0x1c1   :  { %3700 = vmatpush1.bf16.msra.mxu0 %v5188_v46  ;;  %3864 = vmatpush1.bf16.msra.mxu1 %v5191_v48  ;;  %v5274_v46 = vld [vmem:[#allocation4 + $0x504] ss:$16 sps:$4 sm:$0xff]   ;;  %v5277_v48 = vld [vmem:[#allocation4 + $0x50c] ss:$16 sps:$4 sm:$0xff]  }
 0x1c2   :  { %3701 = vmatprep.subr.bf16.mxu0 %v5196_v49  ;;  %3865 = vmatprep.subr.bf16.mxu1 %v5199_v50  ;;  %v5272_v49 = vld [vmem:[#allocation4 + $0x500] ss:$16 sps:$4 sm:$0xff]   ;;  %v5275_v50 = vld [vmem:[#allocation4 + $0x508] ss:$16 sps:$4 sm:$0xff]  }
 0x1c5   :  { %3702 = vmatpush1.bf16.msra.mxu0 %v5194_v51  ;;  %3866 = vmatpush1.bf16.msra.mxu1 %v5197_v52  ;;  %v5280_v51 = vld [vmem:[#allocation4 + $0x524] ss:$16 sps:$4 sm:$0xff]   ;;  %v5283_v52 = vld [vmem:[#allocation4 + $0x52c] ss:$16 sps:$4 sm:$0xff]  }
 0x1c6   :  { %3703 = vmatprep.subr.bf16.mxu0 %v5202_v16  ;;  %3867 = vmatprep.subr.bf16.mxu1 %v5205_v53  ;;  %v1965_v16 = vcombine.high %v5652_v35, %v5652_v35  ;;  %v5278_v53 = vld [vmem:[#allocation4 + $0x520] ss:$16 sps:$4 sm:$0xff]  }
 0x1c7   :  { %v5290_v35 = vld [vmem:[#allocation4 + $0x560] ss:$16 sps:$4 sm:$0xff]  }
 0x1c9   :  { %3704 = vmatpush1.bf16.msra.mxu0 %v5200_v55  ;;  %3868 = vmatpush1.bf16.msra.mxu1 %v5203_v0  ;;  %v5286_v55 = vld [vmem:[#allocation4 + $0x544] ss:$16 sps:$4 sm:$0xff]   ;;  %v5289_v0 = vld [vmem:[#allocation4 + $0x54c] ss:$16 sps:$4 sm:$0xff]  }
 0x1ca   :  { %3705 = vmatprep.subr.bf16.mxu0 %v5208_v56  ;;  %3869 = vmatprep.subr.bf16.mxu1 %v5211_v57  ;;  %v1979_v56 = vrot.slane %v1965_v16, %v5647_v34  ;;  %v5284_v57 = vld [vmem:[#allocation4 + $0x540] ss:$16 sps:$4 sm:$0xff]   ;;  %v5332_v16 = vld [vmem:[#allocation4 + $0x62c] ss:$16 sps:$4 sm:$0xff]  }
 0x1cd   :  { %3706 = vmatpush1.bf16.msra.mxu0 %v5206_v59  ;;  %3870 = vmatpush1.bf16.msra.mxu1 %v5209_v61  ;;  %v5292_v59 = vld [vmem:[#allocation4 + $0x564] ss:$16 sps:$4 sm:$0xff]   ;;  %v5295_v61 = vld [vmem:[#allocation4 + $0x56c] ss:$16 sps:$4 sm:$0xff]  }
 0x1ce   :  { %3707 = vmatprep.subr.bf16.mxu0 %v5214_v60  ;;  %3871 = vmatprep.subr.bf16.mxu1 %v5217_v62  ;;  %v1981_v60 = vcombine.high %v1979_v56, %v1979_v56  ;;  %v5293_v62 = vld [vmem:[#allocation4 + $0x568] ss:$16 sps:$4 sm:$0xff]  }
 0x1d1   :  { %3708 = vmatpush1.bf16.msra.mxu0 %v5212_v1  ;;  %3872 = vmatpush1.bf16.msra.mxu1 %v5215_v2  ;;  %v2009_v1 = vrot.slane %v1981_v60, %v5647_v34  ;;  %v5296_v2 = vld [vmem:[#allocation4 + $0x580] ss:$16 sps:$4 sm:$0xff]  }
 0x1d2   :  { %3709 = vmatprep.subr.bf16.mxu0 %v5220_v3  ;;  %3873 = vmatprep.subr.bf16.mxu1 %v5223_v4  ;;  %v5299_v3 = vld [vmem:[#allocation4 + $0x588] ss:$16 sps:$4 sm:$0xff]   ;;  %v5304_v4 = vld [vmem:[#allocation4 + $0x5a4] ss:$16 sps:$4 sm:$0xff]   ;;  %v5339_v60 = vld [vmem:[#allocation4 + $0x660] ss:$16 sps:$4 sm:$0xff]  }
 0x1d5   :  { %3710 = vmatpush1.bf16.msra.mxu0 %v5218_v6  ;;  %3874 = vmatpush1.bf16.msra.mxu1 %v5221_v7  ;;  %v5679_v6 = vrot.slane %v1979_v56, %v5647_v34  ;;  %v2013_v7 = vcombine.high %v2009_v1, %v2009_v1  ;;  %v5338_v56 = vld [vmem:[#allocation4 + $0x64c] ss:$16 sps:$4 sm:$0xff]  }
 0x1d6   :  { %3720 = vmatprep.subr.bf16.mxu0 %v5226_v8  ;;  %3884 = vmatprep.subr.bf16.mxu1 %v5229_v9  ;;  %v5302_v8 = vld [vmem:[#allocation4 + $0x5a0] ss:$16 sps:$4 sm:$0xff]   ;;  %v5305_v9 = vld [vmem:[#allocation4 + $0x5a8] ss:$16 sps:$4 sm:$0xff]  }
 0x1d7   :  { %v2043_v47 = vpack.i.b16 %v5679_v6, %v5679_v6 }
 0x1d8   :  { %3712 = vmatmul.mubr.bf16.vlgmr.msra.gmra.mrb[8].mxu0 %v2096_v14  ;;  %3876 = vmatmul.mubr.bf16.vlgmr.msra.gmra.mrb[8].mxu1 %v2096_v14 }
 0x1d9   :  { %3721 = vmatpush1.bf16.msra.mxu0 %v5224_v10  ;;  %3885 = vmatpush1.bf16.msra.mxu1 %v5227_v11  ;;  %v2050_v10 = vpack.i.b16 %v2009_v1, %v2009_v1  ;;  %v5311_v11 = vld [vmem:[#allocation4 + $0x5c4] ss:$16 sps:$4 sm:$0xff]   ;;  %v2048_v14 = vrot.slane %v2043_v47, %v5662_v28  ;;  %v5348_v1 = vld [vmem:[#allocation4 + $0x688] ss:$16 sps:$4 sm:$0xff]  }
 0x1da   :  { %3722 = vmatprep.subr.bf16.mxu0 %v5232_v12  ;;  %3886 = vmatprep.subr.bf16.mxu1 %v5235_v13  ;;  %v5314_v12 = vld [vmem:[#allocation4 + $0x5cc] ss:$16 sps:$4 sm:$0xff]   ;;  %v2064_v13 = vpack.i.b16 %v2013_v7, %v2013_v7  ;;  %v5359_v7 = vld [vmem:[#allocation4 + $0x6c4] ss:$16 sps:$4 sm:$0xff]   ;;  %v5360_v47 = vld [vmem:[#allocation4 + $0x6c8] ss:$16 sps:$4 sm:$0xff]  }
 0x1dd   :  { %3723 = vmatpush1.bf16.msra.mxu0 %v5230_v15  ;;  %3887 = vmatpush1.bf16.msra.mxu1 %v5233_v17  ;;  %v5309_v15 = vld [vmem:[#allocation4 + $0x5c0] ss:$16 sps:$4 sm:$0xff]   ;;  %v5312_v17 = vld [vmem:[#allocation4 + $0x5c8] ss:$16 sps:$4 sm:$0xff]  }
 0x1de   :  { %3724 = vmatprep.subr.bf16.mxu0 %v5238_v18  ;;  %3888 = vmatprep.subr.bf16.mxu1 %v5241_v20  ;;  %v2055_v20 = vrot.slane %v2050_v10, %v5662_v28  ;;  %v5365_v10 = vld [vmem:[#allocation4 + $0x6e4] ss:$16 sps:$4 sm:$0xff]  }
 0x1e1   :  { %3725 = vmatpush1.bf16.msra.mxu0 %v5236_v21  ;;  %3889 = vmatpush1.bf16.msra.mxu1 %v5239_v22  ;;  %v5317_v21 = vld [vmem:[#allocation4 + $0x5e4] ss:$16 sps:$4 sm:$0xff]   ;;  %v5320_v22 = vld [vmem:[#allocation4 + $0x5ec] ss:$16 sps:$4 sm:$0xff]  }
 0x1e2   :  { %3726 = vmatprep.subr.bf16.mxu0 %v5244_v23  ;;  %3890 = vmatprep.subr.bf16.mxu1 %v5247_v24 }
 0x1e5   :  { %3727 = vmatpush1.bf16.msra.mxu0 %v5242_v25  ;;  %3891 = vmatpush1.bf16.msra.mxu1 %v5245_v26  ;;  %v2069_v26 = vrot.slane %v2064_v13, %v5662_v28  ;;  %v5366_v13 = vld [vmem:[#allocation4 + $0x6e8] ss:$16 sps:$4 sm:$0xff]  }
 0x1e6   :  { %3728 = vmatprep.subr.bf16.mxu0 %v5250_v27  ;;  %3892 = vmatprep.subr.bf16.mxu1 %v5253_v29 }
 0x1e9   :  { %3729 = vmatpush1.bf16.msra.mxu0 %v5248_v30  ;;  %3893 = vmatpush1.bf16.msra.mxu1 %v5251_v31 }
 0x1ea   :  { %3730 = vmatprep.subr.bf16.mxu0 %v5256_v32  ;;  %3894 = vmatprep.subr.bf16.mxu1 %v5259_v33 }
 0x1ed   :  { %3731 = vmatpush1.bf16.msra.mxu0 %v5254_v36  ;;  %3895 = vmatpush1.bf16.msra.mxu1 %v5257_v37  ;;  %v5315_v37 = vld [vmem:[#allocation4 + $0x5e0] ss:$16 sps:$4 sm:$0xff]  }
 0x1ee   :  { %3732 = vmatprep.subr.bf16.mxu0 %v5262_v19  ;;  %3896 = vmatprep.subr.bf16.mxu1 %v5265_v39  ;;  %v5318_v19 = vld [vmem:[#allocation4 + $0x5e8] ss:$16 sps:$4 sm:$0xff]  }
 0x1f1   :  { %3733 = vmatpush1.bf16.msra.mxu0 %v5260_v40  ;;  %3897 = vmatpush1.bf16.msra.mxu1 %v5263_v41  ;;  %v5323_v41 = vld [vmem:[#allocation4 + $0x604] ss:$16 sps:$4 sm:$0xff]  }
 0x1f2   :  { %3734 = vmatprep.subr.bf16.mxu0 %v5268_v42  ;;  %3898 = vmatprep.subr.bf16.mxu1 %v5271_v43  ;;  %v5326_v42 = vld [vmem:[#allocation4 + $0x60c] ss:$16 sps:$4 sm:$0xff]  }
 0x1f5   :  { %3735 = vmatpush1.bf16.msra.mxu0 %v5266_v44  ;;  %3899 = vmatpush1.bf16.msra.mxu1 %v5269_v45 }
 0x1f6   :  { %3736 = vmatprep.subr.bf16.mxu0 %v5274_v46  ;;  %3900 = vmatprep.subr.bf16.mxu1 %v5277_v48  ;;  %v5321_v46 = vld [vmem:[#allocation4 + $0x600] ss:$16 sps:$4 sm:$0xff]   ;;  %v5324_v48 = vld [vmem:[#allocation4 + $0x608] ss:$16 sps:$4 sm:$0xff]  }
 0x1f9   :  { %3737 = vmatpush1.bf16.msra.mxu0 %v5272_v49  ;;  %3901 = vmatpush1.bf16.msra.mxu1 %v5275_v50 }
 0x1fa   :  { %3738 = vmatprep.subr.bf16.mxu0 %v5280_v51  ;;  %3902 = vmatprep.subr.bf16.mxu1 %v5283_v52  ;;  %v5329_v52 = vld [vmem:[#allocation4 + $0x624] ss:$16 sps:$4 sm:$0xff]  }
 0x1fd   :  { %3739 = vmatpush1.bf16.msra.mxu0 %v5278_v53  ;;  %3903 = vmatpush1.bf16.msra.mxu1 %v5281_v54  ;;  %v5327_v54 = vld [vmem:[#allocation4 + $0x620] ss:$16 sps:$4 sm:$0xff]  }
 0x1fe   :  { %3740 = vmatprep.subr.bf16.mxu0 %v5286_v55  ;;  %3904 = vmatprep.subr.bf16.mxu1 %v5289_v0  ;;  %v5330_v55 = vld [vmem:[#allocation4 + $0x628] ss:$16 sps:$4 sm:$0xff]   ;;  %v5335_v0 = vld [vmem:[#allocation4 + $0x644] ss:$16 sps:$4 sm:$0xff]  }
 0x201   :  { %3741 = vmatpush1.bf16.msra.mxu0 %v5284_v57  ;;  %3905 = vmatpush1.bf16.msra.mxu1 %v5287_v58  ;;  %v5333_v57 = vld [vmem:[#allocation4 + $0x640] ss:$16 sps:$4 sm:$0xff]   ;;  %v5336_v58 = vld [vmem:[#allocation4 + $0x648] ss:$16 sps:$4 sm:$0xff]  }
 0x202   :  { %3742 = vmatprep.subr.bf16.mxu0 %v5292_v59  ;;  %3906 = vmatprep.subr.bf16.mxu1 %v5295_v61  ;;  %v5341_v59 = vld [vmem:[#allocation4 + $0x664] ss:$16 sps:$4 sm:$0xff]   ;;  %v5344_v61 = vld [vmem:[#allocation4 + $0x66c] ss:$16 sps:$4 sm:$0xff]  }
 0x205   :  { %3743 = vmatpush1.bf16.msra.mxu0 %v5290_v35  ;;  %3907 = vmatpush1.bf16.msra.mxu1 %v5293_v62  ;;  %v5342_v35 = vld [vmem:[#allocation4 + $0x668] ss:$16 sps:$4 sm:$0xff]   ;;  %v5347_v62 = vld [vmem:[#allocation4 + $0x684] ss:$16 sps:$4 sm:$0xff]  }
 0x206   :  { %3744 = vmatprep.subr.bf16.mxu0 %v5298_v38  ;;  %3908 = vmatprep.subr.bf16.mxu1 %v5301_v63  ;;  %v5350_v38 = vld [vmem:[#allocation4 + $0x68c] ss:$16 sps:$4 sm:$0xff]   ;;  %v5345_v63 = vld [vmem:[#allocation4 + $0x680] ss:$16 sps:$4 sm:$0xff]  }
 0x209   :  { %3745 = vmatpush1.bf16.msra.mxu0 %v5296_v2  ;;  %3909 = vmatpush1.bf16.msra.mxu1 %v5299_v3  ;;  %v5353_v2 = vld [vmem:[#allocation4 + $0x6a4] ss:$16 sps:$4 sm:$0xff]   ;;  %v5356_v3 = vld [vmem:[#allocation4 + $0x6ac] ss:$16 sps:$4 sm:$0xff]  }
 0x20a   :  { %3746 = vmatprep.subr.bf16.mxu0 %v5304_v4  ;;  %3910 = vmatprep.subr.bf16.mxu1 %v5307_v5  ;;  %v5351_v4 = vld [vmem:[#allocation4 + $0x6a0] ss:$16 sps:$4 sm:$0xff]   ;;  %v5354_v5 = vld [vmem:[#allocation4 + $0x6a8] ss:$16 sps:$4 sm:$0xff]  }
 0x20d   :  { %3747 = vmatpush1.bf16.msra.mxu0 %v5302_v8  ;;  %3911 = vmatpush1.bf16.msra.mxu1 %v5305_v9  ;;  %v5362_v8 = vld [vmem:[#allocation4 + $0x6cc] ss:$16 sps:$4 sm:$0xff]   ;;  %v5357_v9 = vld [vmem:[#allocation4 + $0x6c0] ss:$16 sps:$4 sm:$0xff]  }
 0x20e   :  { %v1866_v18 = vpop.f32.mrb[4].mxu0  ;;  %3748 = vmatprep.subr.bf16.mxu0 %v5311_v11  ;;  %3912 = vmatprep.subr.bf16.mxu1 %v5314_v12  ;;  %v5685_v24 = vpop.f32.mrb[4].mxu1  ;;  %v5368_v11 = vld [vmem:[#allocation4 + $0x6ec] ss:$16 sps:$4 sm:$0xff]   ;;  %v5363_v12 = vld [vmem:[#allocation4 + $0x6e0] ss:$16 sps:$4 sm:$0xff]  }
 0x20f   :  { %v1959_v23 = vpack.c.bf16 %v1866_v18, %v1866_v18  ;;  %v1868_v25 = vpop.f32.mrb[5].mxu0  ;;  %v1950_v29 = vpop.f32.mrb[5].mxu1  ;;  %v5372_v18 = vld [vmem:[#allocation4 + $0x708] ss:$16 sps:$4 sm:$0xff]  }
 0x210   :  { %v1960_v27 = vpack.c.bf16 %v1868_v25, %v1868_v25  ;;  %v1870_v30 = vpop.f32.mrb[6].mxu0  ;;  %v1962_v32 = vpack.c.bf16 %v1950_v29, %v1950_v29  ;;  %v1952_v33 = vpop.f32.mrb[6].mxu1  ;;  %v5383_v25 = vld [vmem:[#allocation4 + $0x744] ss:$16 sps:$4 sm:$0xff]   ;;  %v5384_v29 = vld [vmem:[#allocation4 + $0x748] ss:$16 sps:$4 sm:$0xff]  }
 0x211   :  { %v2074_v31 = vadd.bf16 %v2048_v14, %v1959_v23  ;;  %3749 = vmatpush1.bf16.msra.mxu0 %v5309_v15  ;;  %3913 = vmatpush1.bf16.msra.mxu1 %v5312_v17  ;;  %v1871_v36 = vpop.f32.mrb[7].mxu0  ;;  %v1953_v40 = vpop.f32.mrb[7].mxu1  ;;  %v5371_v14 = vld [vmem:[#allocation4 + $0x704] ss:$16 sps:$4 sm:$0xff]   ;;  %v5374_v15 = vld [vmem:[#allocation4 + $0x70c] ss:$16 sps:$4 sm:$0xff]  }
 0x212   :  { %v2075_v39 = vadd.bf16 %v2055_v20, %v1960_v27  ;;  %3750 = vmatprep.subr.bf16.mxu0 %v5317_v21  ;;  %3914 = vmatprep.subr.bf16.mxu1 %v5320_v22  ;;  %v2077_v44 = vadd.bf16 %v2069_v26, %v1962_v32  ;;  %v5369_v17 = vld [vmem:[#allocation4 + $0x700] ss:$16 sps:$4 sm:$0xff]   ;;  %v5377_v20 = vld [vmem:[#allocation4 + $0x724] ss:$16 sps:$4 sm:$0xff]   ;;  %v5380_v21 = vld [vmem:[#allocation4 + $0x72c] ss:$16 sps:$4 sm:$0xff]  }
 0x213   :  { %v2090_v43 = vmul.bf16 1009007652, %v2074_v31  ;;  %vm2082_vm7 = vcmp.ge.bf16.partialorder %v2074_v31, 0  ;;  %v5375_v22 = vld [vmem:[#allocation4 + $0x720] ss:$16 sps:$4 sm:$0xff]  }
 0x214   :  { %vm2083_vm6 = vcmp.ge.bf16.partialorder %v2075_v39, 0  ;;  %v2091_v45 = vmul.bf16 1009007652, %v2075_v39  ;;  %v2093_v49 = vmul.bf16 1009007652, %v2077_v44  ;;  %vm2085_vm8 = vcmp.ge.bf16.partialorder %v2077_v44, 0 }
 0x215   :  { %3751 = vmatpush1.bf16.msra.mxu0 %v5315_v37  ;;  %3915 = vmatpush1.bf16.msra.mxu1 %v5318_v19  ;;  %v2098_v51 = vsel %vm2082_vm7, %v2074_v31, %v2090_v43  ;;  %v5378_v23 = vld [vmem:[#allocation4 + $0x728] ss:$16 sps:$4 sm:$0xff]   ;;  %v5386_v26 = vld [vmem:[#allocation4 + $0x74c] ss:$16 sps:$4 sm:$0xff]   ;;  %v5381_v27 = vld [vmem:[#allocation4 + $0x740] ss:$16 sps:$4 sm:$0xff]   ;;  %v2011_v19 = vcombine.high %v5679_v6, %v5679_v6  ;;  %v1961_v6 = vpack.c.bf16 %v5685_v24, %v5685_v24 }
 0x216   :  { %v2099_v50 = vsel %vm2083_vm6, %v2075_v39, %v2091_v45  ;;  %3761 = vmatprep.subr.bf16.mxu0 %v5323_v41  ;;  %3925 = vmatprep.subr.bf16.mxu1 %v5326_v42  ;;  %v2101_v53 = vsel %vm2085_vm8, %v2077_v44, %v2093_v49  ;;  %v5389_v30 = vld [vmem:[#allocation4 + $0x764] ss:$16 sps:$4 sm:$0xff]   ;;  %v5392_v31 = vld [vmem:[#allocation4 + $0x76c] ss:$16 sps:$4 sm:$0xff]   ;;  %v5387_v32 = vld [vmem:[#allocation4 + $0x760] ss:$16 sps:$4 sm:$0xff]  }
 0x217   :  { %3752 = vmatprep.mubr.bf16.mxu0 %v2099_v50  ;;  %3916 = vmatprep.mubr.bf16.mxu1 %v2099_v50  ;;  %v5390_v33 = vld [vmem:[#allocation4 + $0x768] ss:$16 sps:$4 sm:$0xff]   ;;  %v5395_v36 = vld [vmem:[#allocation4 + $0x784] ss:$16 sps:$4 sm:$0xff]   ;;  %v5398_v37 = vld [vmem:[#allocation4 + $0x78c] ss:$16 sps:$4 sm:$0xff]   ;;  %v2057_v43 = vpack.i.b16 %v2011_v19, %v2011_v19 }
 0x218   :  { %3753 = vmatmul.mubr.bf16.vlgmr.msra.gmra.mrb[8].mxu0 %v2098_v51  ;;  %3917 = vmatmul.mubr.bf16.vlgmr.msra.gmra.mrb[8].mxu1 %v2098_v51  ;;  %v5393_v39 = vld [vmem:[#allocation4 + $0x780] ss:$16 sps:$4 sm:$0xff]   ;;  %v5396_v40 = vld [vmem:[#allocation4 + $0x788] ss:$16 sps:$4 sm:$0xff]   ;;  %v5401_v41 = vld [vmem:[#allocation4 + $0x7a4] ss:$16 sps:$4 sm:$0xff]  }
 0x219   :  { %3762 = vmatpush1.bf16.msra.mxu0 %v5321_v46  ;;  %3926 = vmatpush1.bf16.msra.mxu1 %v5324_v48  ;;  %v5404_v42 = vld [vmem:[#allocation4 + $0x7ac] ss:$16 sps:$4 sm:$0xff]   ;;  %v5399_v44 = vld [vmem:[#allocation4 + $0x7a0] ss:$16 sps:$4 sm:$0xff]   ;;  %v5402_v45 = vld [vmem:[#allocation4 + $0x7a8] ss:$16 sps:$4 sm:$0xff]   ;;  %v2062_v49 = vrot.slane %v2057_v43, %v5662_v28 }
 0x21a   :  { %3793 = vmatprep.mubr.bf16.mxu0 %v2101_v53  ;;  %3957 = vmatprep.mubr.bf16.mxu1 %v2101_v53  ;;  %v5407_v46 = vld [vmem:[#allocation4 + $0x7c4] ss:$16 sps:$4 sm:$0xff]   ;;  %v5410_v48 = vld [vmem:[#allocation4 + $0x7cc] ss:$16 sps:$4 sm:$0xff]   ;;  %v5405_v50 = vld [vmem:[#allocation4 + $0x7c0] ss:$16 sps:$4 sm:$0xff]  }
 0x21b   :  { %3763 = vmatprep.subr.bf16.mxu0 %v5329_v52  ;;  %3927 = vmatprep.subr.bf16.mxu1 %v5332_v16  ;;  %v5408_v51 = vld [vmem:[#allocation4 + $0x7c8] ss:$16 sps:$4 sm:$0xff]   ;;  %v5413_v52 = vld [vmem:[#allocation4 + $0x7e4] ss:$16 sps:$4 sm:$0xff]   ;;  %v5416_v16 = vld [vmem:[#allocation4 + $0x7ec] ss:$16 sps:$4 sm:$0xff]   ;;  %v2076_v53 = vadd.bf16 %v2062_v49, %v1961_v6 }
 0x21d   :  { %3764 = vmatpush1.bf16.msra.mxu0 %v5327_v54  ;;  %3928 = vmatpush1.bf16.msra.mxu1 %v5330_v55  ;;  %v5411_v54 = vld [vmem:[#allocation4 + $0x7e0] ss:$16 sps:$4 sm:$0xff]   ;;  %v5414_v55 = vld [vmem:[#allocation4 + $0x7e8] ss:$16 sps:$4 sm:$0xff]   ;;  %v2092_v24 = vmul.bf16 1009007652, %v2076_v53 }
 0x21e   :  { %3765 = vmatprep.subr.bf16.mxu0 %v5335_v0  ;;  %3929 = vmatprep.subr.bf16.mxu1 %v5338_v56  ;;  %v5417_v0 = vld [vmem:[#allocation6 + $0x40] sm:$0xff]   ;;  %vm2084_vm9 = vcmp.ge.bf16.partialorder %v2076_v53, 0 }
 0x21f   :  { %v5418_v56 = vld [vmem:[#allocation6 + $0xc0] sm:$0xff]  }
 0x221   :  { %3766 = vmatpush1.bf16.msra.mxu0 %v5333_v57  ;;  %3930 = vmatpush1.bf16.msra.mxu1 %v5336_v58  ;;  %v5419_v57 = vld [vmem:[#allocation6] sm:$0xff]  }
 0x222   :  { %3767 = vmatprep.subr.bf16.mxu0 %v5341_v59  ;;  %3931 = vmatprep.subr.bf16.mxu1 %v5344_v61  ;;  %v5420_v58 = vld [vmem:[#allocation6 + $0x80] sm:$0xff]   ;;  %v5421_v59 = vld [vmem:[#allocation6 + $0x48] sm:$0xff]  }
 0x223   :  { %v5422_v61 = vld [vmem:[#allocation6 + $0xc8] sm:$0xff]  }
 0x225   :  { %3768 = vmatpush1.bf16.msra.mxu0 %v5339_v60  ;;  %3932 = vmatpush1.bf16.msra.mxu1 %v5342_v35  ;;  %v2100_v60 = vsel %vm2084_vm9, %v2076_v53, %v2092_v24  ;;  %v5423_v35 = vld [vmem:[#allocation6 + $0x8] sm:$0xff]  }
 0x226   :  { %3769 = vmatprep.subr.bf16.mxu0 %v5347_v62  ;;  %3933 = vmatprep.subr.bf16.mxu1 %v5350_v38  ;;  %v5424_v62 = vld [vmem:[#allocation6 + $0x88] sm:$0xff]   ;;  %v5425_v38 = vld [vmem:[#allocation6 + $0x50] sm:$0xff]  }
 0x229   :  { %3770 = vmatpush1.bf16.msra.mxu0 %v5345_v63  ;;  %3934 = vmatpush1.bf16.msra.mxu1 %v5348_v1  ;;  %v5426_v63 = vld [vmem:[#allocation6 + $0xd0] sm:$0xff]  }
 0x22a   :  { %3771 = vmatprep.subr.bf16.mxu0 %v5353_v2  ;;  %3935 = vmatprep.subr.bf16.mxu1 %v5356_v3  ;;  %v5427_v1 = vld [vmem:[#allocation6 + $0x10] sm:$0xff]   ;;  %v5429_v3 = vld [vmem:[#allocation6 + $0x58] sm:$0xff]  }
 0x22b   :  { %v5428_v2 = vld [vmem:[#allocation6 + $0x90] sm:$0xff]  }
 0x22d   :  { %3772 = vmatpush1.bf16.msra.mxu0 %v5351_v4  ;;  %3936 = vmatpush1.bf16.msra.mxu1 %v5354_v5  ;;  %v5430_v4 = vld [vmem:[#allocation6 + $0xd8] sm:$0xff]  }
 0x22e   :  { %3773 = vmatprep.subr.bf16.mxu0 %v5359_v7  ;;  %3937 = vmatprep.subr.bf16.mxu1 %v5362_v8  ;;  %v5431_v5 = vld [vmem:[#allocation6 + $0x18] sm:$0xff]   ;;  %v5433_v8 = vld [vmem:[#allocation6 + $0x60] sm:$0xff]  }
 0x22f   :  { %v5432_v7 = vld [vmem:[#allocation6 + $0x98] sm:$0xff]  }
 0x231   :  { %3774 = vmatpush1.bf16.msra.mxu0 %v5357_v9  ;;  %3938 = vmatpush1.bf16.msra.mxu1 %v5360_v47  ;;  %v5434_v9 = vld [vmem:[#allocation6 + $0xe0] sm:$0xff]  }
 0x232   :  { %3775 = vmatprep.subr.bf16.mxu0 %v5365_v10  ;;  %3939 = vmatprep.subr.bf16.mxu1 %v5368_v11  ;;  %v5435_v47 = vld [vmem:[#allocation6 + $0x20] sm:$0xff]   ;;  %v5437_v11 = vld [vmem:[#allocation6 + $0x68] sm:$0xff]  }
 0x233   :  { %v5436_v10 = vld [vmem:[#allocation6 + $0xa0] sm:$0xff]  }
 0x235   :  { %3776 = vmatpush1.bf16.msra.mxu0 %v5363_v12  ;;  %3940 = vmatpush1.bf16.msra.mxu1 %v5366_v13  ;;  %v5438_v12 = vld [vmem:[#allocation6 + $0xe8] sm:$0xff]  }
 0x236   :  { %3777 = vmatprep.subr.bf16.mxu0 %v5371_v14  ;;  %3941 = vmatprep.subr.bf16.mxu1 %v5374_v15  ;;  %v5439_v13 = vld [vmem:[#allocation6 + $0x28] sm:$0xff]   ;;  %v5441_v15 = vld [vmem:[#allocation6 + $0x70] sm:$0xff]  }
 0x237   :  { %v5440_v14 = vld [vmem:[#allocation6 + $0xa8] sm:$0xff]  }
 0x239   :  { %3778 = vmatpush1.bf16.msra.mxu0 %v5369_v17  ;;  %3942 = vmatpush1.bf16.msra.mxu1 %v5372_v18  ;;  %v5442_v17 = vld [vmem:[#allocation6 + $0xf0] sm:$0xff]  }
 0x23a   :  { %3779 = vmatprep.subr.bf16.mxu0 %v5377_v20  ;;  %3943 = vmatprep.subr.bf16.mxu1 %v5380_v21  ;;  %v5443_v18 = vld [vmem:[#allocation6 + $0x30] sm:$0xff]   ;;  %v5445_v21 = vld [vmem:[#allocation6 + $0x78] sm:$0xff]  }
 0x23b   :  { %v5444_v20 = vld [vmem:[#allocation6 + $0xb0] sm:$0xff]  }
 0x23d   :  { %3780 = vmatpush1.bf16.msra.mxu0 %v5375_v22  ;;  %3944 = vmatpush1.bf16.msra.mxu1 %v5378_v23  ;;  %v5446_v22 = vld [vmem:[#allocation6 + $0xf8] sm:$0xff]  }
 0x23e   :  { %3781 = vmatprep.subr.bf16.mxu0 %v5383_v25  ;;  %3945 = vmatprep.subr.bf16.mxu1 %v5386_v26  ;;  %v5447_v23 = vld [vmem:[#allocation6 + $0x38] sm:$0xff]   ;;  %v4905_v26 = vld.sshfl [vmem:[%s5713_s4] sm:$0x33 pattern:$0x75316420] }
 0x23f   :  { %v5448_v25 = vld [vmem:[#allocation6 + $0xb8] sm:$0xff]  }
 0x241   :  { %3782 = vmatpush1.bf16.msra.mxu0 %v5381_v27  ;;  %3946 = vmatpush1.bf16.msra.mxu1 %v5384_v29  ;;  %v3979_v27 = vcombine.high %v4905_v26, %v4905_v26  ;;  %v3986_v29 = vrot.slane %v4905_v26, %v5647_v34 }
 0x242   :  { %3783 = vmatprep.subr.bf16.mxu0 %v5389_v30  ;;  %3947 = vmatprep.subr.bf16.mxu1 %v5392_v31 }
 0x243   :  { %v3993_v30 = vrot.slane %v3979_v27, %v5647_v34  ;;  %v3994_v31 = vcombine.high %v3986_v29, %v3986_v29 }
 0x245   :  { %3784 = vmatpush1.bf16.msra.mxu0 %v5387_v32  ;;  %3948 = vmatpush1.bf16.msra.mxu1 %v5390_v33  ;;  %v3995_v32 = vcombine.high %v3993_v30, %v3993_v30  ;;  %v3997_v33 = vpack.i.b16 %v3986_v29, %v3986_v29 }
 0x246   :  { %3785 = vmatprep.subr.bf16.mxu0 %v5395_v36  ;;  %3949 = vmatprep.subr.bf16.mxu1 %v5398_v37  ;;  %v4011_v36 = vpack.i.b16 %v3994_v31, %v3994_v31  ;;  %v4004_v37 = vpack.i.b16 %v3993_v30, %v3993_v30 }
 0x247   :  { %v4018_v19 = vpack.i.b16 %v3995_v32, %v3995_v32 }
 0x248   :  { %v4009_v43 = vrot.slane %v4004_v37, %v5662_v28 }
 0x249   :  { %3786 = vmatpush1.bf16.msra.mxu0 %v5393_v39  ;;  %3950 = vmatpush1.bf16.msra.mxu1 %v5396_v40  ;;  %v4002_v39 = vrot.slane %v3997_v33, %v5662_v28  ;;  %v4016_v40 = vrot.slane %v4011_v36, %v5662_v28 }
 0x24a   :  { %3787 = vmatprep.subr.bf16.mxu0 %v5401_v41  ;;  %3951 = vmatprep.subr.bf16.mxu1 %v5404_v42 }
 0x24d   :  { %3788 = vmatpush1.bf16.msra.mxu0 %v5399_v44  ;;  %3952 = vmatpush1.bf16.msra.mxu1 %v5402_v45  ;;  %v4023_v44 = vrot.slane %v4018_v19, %v5662_v28 }
 0x24e   :  { %3789 = vmatprep.subr.bf16.mxu0 %v5407_v46  ;;  %3953 = vmatprep.subr.bf16.mxu1 %v5410_v48 }
 0x251   :  { %3790 = vmatpush1.bf16.msra.mxu0 %v5405_v50  ;;  %3954 = vmatpush1.bf16.msra.mxu1 %v5408_v51 }
 0x252   :  { %3791 = vmatprep.subr.bf16.mxu0 %v5413_v52  ;;  %3955 = vmatprep.subr.bf16.mxu1 %v5416_v16 }
 0x255   :  { %3792 = vmatpush1.bf16.msra.mxu0 %v5411_v54  ;;  %3956 = vmatpush1.bf16.msra.mxu1 %v5414_v55 }
 0x256   :  { %4938 = vmatprep.subr.bf16.mxu0 %v5417_v0  ;;  %4960 = vmatprep.subr.bf16.mxu1 %v5418_v56 }
 0x258   :  { %3794 = vmatmul.mubr.bf16.vlgmr.msra.gmra.mrb[8].mxu0 %v2100_v60  ;;  %3958 = vmatmul.mubr.bf16.vlgmr.msra.gmra.mrb[8].mxu1 %v2100_v60 }
 0x259   :  { %4939 = vmatpush3.bf16.msra.mxu0 %v5419_v57  ;;  %4961 = vmatpush3.bf16.msra.mxu1 %v5420_v58 }
 0x25a   :  { %4940 = vmatprep.subr.bf16.mxu0 %v5421_v59  ;;  %4962 = vmatprep.subr.bf16.mxu1 %v5422_v61 }
 0x25d   :  { %4941 = vmatpush3.bf16.msra.mxu0 %v5423_v35  ;;  %4963 = vmatpush3.bf16.msra.mxu1 %v5424_v62  ;;  %v4104_v62 = vld [vmem:[%s5715_s6] sm:$0x1] }
 0x25e   :  { %4942 = vmatprep.subr.bf16.mxu0 %v5425_v38  ;;  %4964 = vmatprep.subr.bf16.mxu1 %v5426_v63  ;;  %v4105_v38 = vunpack.c.l.bf16 %v4104_v62 }
 0x261   :  { %4943 = vmatpush3.bf16.msra.mxu0 %v5427_v1  ;;  %4965 = vmatpush3.bf16.msra.mxu1 %v5428_v2  ;;  %v4109_v2 = vrot.slane %v4105_v38, %v5662_v28 }
 0x262   :  { %4944 = vmatprep.subr.bf16.mxu0 %v5429_v3  ;;  %4966 = vmatprep.subr.bf16.mxu1 %v5430_v4 }
 0x265   :  { %4945 = vmatpush3.bf16.msra.mxu0 %v5431_v5  ;;  %4967 = vmatpush3.bf16.msra.mxu1 %v5432_v7 }
 0x266   :  { %4946 = vmatprep.subr.bf16.mxu0 %v5433_v8  ;;  %4968 = vmatprep.subr.bf16.mxu1 %v5434_v9 }
 0x269   :  { %4947 = vmatpush3.bf16.msra.mxu0 %v5435_v47  ;;  %4969 = vmatpush3.bf16.msra.mxu1 %v5436_v10 }
 0x26a   :  { %4948 = vmatprep.subr.bf16.mxu0 %v5437_v11  ;;  %4970 = vmatprep.subr.bf16.mxu1 %v5438_v12 }
 0x26d   :  { %4949 = vmatpush3.bf16.msra.mxu0 %v5439_v13  ;;  %4971 = vmatpush3.bf16.msra.mxu1 %v5440_v14 }
 0x26e   :  { %4950 = vmatprep.subr.bf16.mxu0 %v5441_v15  ;;  %4972 = vmatprep.subr.bf16.mxu1 %v5442_v17 }
 0x271   :  { %4951 = vmatpush3.bf16.msra.mxu0 %v5443_v18  ;;  %4973 = vmatpush3.bf16.msra.mxu1 %v5444_v20 }
 0x272   :  { %4952 = vmatprep.subr.bf16.mxu0 %v5445_v21  ;;  %4974 = vmatprep.subr.bf16.mxu1 %v5446_v22 }
 0x275   :  { %4953 = vmatpush3.bf16.msra.mxu0 %v5447_v23  ;;  %4975 = vmatpush3.bf16.msra.mxu1 %v5448_v25 }
 0x32b   :  { %v3795_v41 = vpop.f32.mrb[8].mxu0  ;;  %v3959_v42 = vpop.f32.mrb[8].mxu1 }
 0x32c   :  { %v3966_v45 = vpack.c.bf16 %v3795_v41, %v3795_v41  ;;  %v3968_v46 = vpack.c.bf16 %v3959_v42, %v3959_v42  ;;  %v3797_v48 = vpop.f32.mrb[9].mxu0  ;;  %v3961_v34 = vpop.f32.mrb[9].mxu1 }
 0x32d   :  { %v3967_v6 = vpack.c.bf16 %v3797_v48, %v3797_v48  ;;  %v3969_v49 = vpack.c.bf16 %v3961_v34, %v3961_v34  ;;  %v3799_v50 = vpop.f32.mrb[10].mxu0  ;;  %v3963_v51 = vpop.f32.mrb[10].mxu1 }
 0x32e   :  { %v4024_v52 = vadd.bf16 %v4002_v39, %v3966_v45  ;;  %v4026_v16 = vadd.bf16 %v4016_v40, %v3968_v46  ;;  %v3800_v53 = vpop.f32.mrb[11].mxu0  ;;  %v3964_v54 = vpop.f32.mrb[11].mxu1 }
 0x32f   :  { %v4025_v55 = vadd.bf16 %v4009_v43, %v3967_v6  ;;  %v4027_v0 = vadd.bf16 %v4023_v44, %v3969_v49 }
 0x330   :  { %v4032_v56 = vmul.bf16 1009007652, %v4024_v52  ;;  %v4034_v24 = vmul.bf16 1009007652, %v4026_v16  ;;  %vm4028_vm10 = vcmp.ge.bf16.partialorder %v4024_v52, 0  ;;  %vm4030_vm11 = vcmp.ge.bf16.partialorder %v4026_v16, 0 }
 0x331   :  { %vm4029_vm12 = vcmp.ge.bf16.partialorder %v4025_v55, 0  ;;  %v4033_v57 = vmul.bf16 1009007652, %v4025_v55  ;;  %vm4031_vm13 = vcmp.ge.bf16.partialorder %v4027_v0, 0  ;;  %v4035_v58 = vmul.bf16 1009007652, %v4027_v0 }
 0x332   :  { %v4036_v60 = vsel %vm4028_vm10, %v4024_v52, %v4032_v56  ;;  %v4038_v35 = vsel %vm4030_vm11, %v4026_v16, %v4034_v24 }
 0x333   :  { %v4037_v59 = vsel %vm4029_vm12, %v4025_v55, %v4033_v57  ;;  %v4039_v61 = vsel %vm4031_vm13, %v4027_v0, %v4035_v58 }
 0x334   :  { %4334 = vmatprep.mubr.bf16.mxu0 %v4037_v59  ;;  %4374 = vmatprep.mubr.bf16.mxu1 %v4039_v61 }
 0x335   :  { %4335 = vmatmul.mubr.bf16.vlgmr.msra.gmra.mrb[12].mxu0 %v4036_v60  ;;  %4375 = vmatmul.mubr.bf16.vlgmr.msra.gmra.mrb[12].mxu1 %v4038_v35 }
 0x408   :  { %v4954_v63 = vpop.f32.mrb[12].mxu0  ;;  %v4976_v1 = vpop.f32.mrb[12].mxu1 }
 0x409   :  { %v4955_v3 = vpop.f32.mrb[13].mxu0  ;;  %v4977_v4 = vpop.f32.mrb[13].mxu1 }
 0x40a   :  { %v4956_v5 = vadd.f32 %v4955_v3, %v4954_v63  ;;  %v4978_v7 = vadd.f32 %v4977_v4, %v4976_v1  ;;  %v4957_v8 = vpop.f32.mrb[14].mxu0  ;;  %v4979_v9 = vpop.f32.mrb[14].mxu1 }
 0x40b   :  { %v4958_v47 = vpop.f32.mrb[15].mxu0  ;;  %v4980_v10 = vpop.f32.mrb[15].mxu1 }
 0x40c   :  { %v4337_v11 = vadd.f32 %v4956_v5, %v4109_v2 }
 0x40e   :  { %v4377_v12 = vadd.f32 %v4978_v7, %v4337_v11 }
 0x410   :  { %4382 = vst [vmem:[%s5716_s7] sm:$0xff] %v4377_v12 }
 0x411   :  { %4387 = vsyncpa [#allocation3], 1 }
 0x412   :  { %4388 = vsyncpa [#allocation5], 1 }

</bundles_post_ra>
